<compile_context>
chip_gen: v7x
topology: tpu7x:2x2x1
jax: 0.10.0
libtpu: 0.0.40
codegen_flags: <defaults>
</compile_context>

<pallas_src>
import dataclasses
import numpy as np

import jax
import jax.numpy as jnp
from jax import lax
from jax.experimental import pallas as pl
from jax.experimental.pallas import tpu as pltpu


LANES = 128  # TPU vreg lane width; batch elements are packed along lanes.


@dataclasses.dataclass(frozen=True)
class NlpContext:
    # TODO(synk): torchlake's real NlpContext defaults are not in the prompt; these are assumed.
    padding_idx: int = 0
    bos_idx: int = 1
    eos_idx: int = 2


def _round_up(a: int, b: int) -> int:
    return ((a + b - 1) // b) * b


def _make_viterbi_kernel(S_pad: int, S_chunk: int, L: int, Bt: int,
                         bos: int, eos: int, bp_dtype,
                         time_unroll: int, bt_unroll: int):
    n_chunks = S_pad // S_chunk
    hoist_cols = L <= 16  # cap live-vreg pressure from hoisted transition columns

    def kernel(maskT_ref, xT_ref, trans_ref, transT_ref,
               pathT_ref, score_ref, bp_ref, alpha_ref):
        # maskT_ref:  (S_chunk, Bt) int32   mask chunk, batch on lanes
        # xT_ref:     (S_chunk, L, Bt)      emissions chunk (narrow dtype), tags on sublanes
        # trans_ref:  (L, L) f32            transition[from, to]
        # transT_ref: (L, L) f32            transition[to, from] (lane-broadcast columns)
        # pathT_ref:  (S_pad, Bt) int32     decoded path (resident across time chunks)
        # score_ref:  (1, Bt) f32           best path score (resident across time chunks)
        # bp_ref:     (S_pad, L, Bt)        backpointer scratch (persists across chunks)
        # alpha_ref:  (L, Bt) f32           Viterbi alpha carried across time chunks
        t = pl.program_id(1)          # time-chunk index ("arbitrary" inner grid axis)
        t0 = t * S_chunk              # global time offset of this chunk
        sub_ids = lax.broadcasted_iota(jnp.int32, (L, Bt), 0)  # tag index on sublanes

        if hoist_cols:
            transT = transT_ref[...]                                   # (L_to, L_from)
            tcols = [jnp.broadcast_to(transT[:, i:i + 1], (L, Bt)) for i in range(L)]

            def tcol(i):
                return tcols[i]
        else:
            def tcol(i):
                # re-materialize per use to avoid L live (L,128) tiles across the loop
                return jnp.broadcast_to(transT_ref[:, i:i + 1], (L, Bt))

        def step(s, carry):
            g = t0 + s
            em = xT_ref[s].astype(jnp.float32)            # (L, Bt) emissions at time g
            m = maskT_ref[pl.ds(s, 1), :] != 0            # (1, Bt)

            @pl.when(g == 0)
            def _():
                # alpha_0[j, b] = trans[bos, j] + emission[b, 0, j]
                alpha_ref[...] = tcol(bos) + em

            @pl.when(g > 0)
            def _():
                a = alpha_ref[...]                        # (L_from, Bt), previous alpha
                # Running elementwise max over "from": zero sublane reductions,
                # exact first-index tie-break (strict > keeps the earliest index).
                running = tcol(0) + a[0:1, :]             # cand[from=0][to, b]
                bp = jnp.zeros((L, Bt), jnp.int32)
                for i in range(1, L):                     # static unroll over "from"
                    cand = tcol(i) + a[i:i + 1, :]
                    upd = cand > running
                    bp = jnp.where(upd, i, bp)
                    running = jnp.maximum(running, cand)
                bp = jnp.where(m, bp, sub_ids)            # identity pointer on padding
                bp_ref[g] = bp.astype(bp_dtype)
                alpha_ref[...] = jnp.where(m, running + em, a)

            return carry

        lax.fori_loop(0, S_chunk, step, 0, unroll=time_unroll)

        @pl.when(t == n_chunks - 1)
        def _():
            # Terminal transition to EOS + backtrack (once per batch tile).
            a = alpha_ref[...]
            eos_col = jnp.broadcast_to(trans_ref[:, eos:eos + 1], (L, Bt))
            final = a + eos_col                            # final[i, b] = alpha[i, b] + trans[i, eos]
            score = jnp.max(final, axis=0, keepdims=True)  # (1, Bt)
            cur = jnp.min(jnp.where(final == score, sub_ids, L),
                          axis=0, keepdims=True).astype(jnp.int32)  # first-index argmax
            score_ref[...] = score
            pathT_ref[pl.ds(S_pad - 1, 1), :] = cur

            def backtrack(k, cur_tag):
                tt = S_pad - 1 - k
                bp_t = bp_ref[tt].astype(jnp.int32)        # (L, Bt)
                prev = jnp.sum(jnp.where(sub_ids == cur_tag, bp_t, 0),
                               axis=0, keepdims=True)      # bp[tt, cur, b]
                pathT_ref[pl.ds(tt - 1, 1), :] = prev
                return prev

            lax.fori_loop(0, S_pad - 1, backtrack, cur, unroll=bt_unroll)

    return kernel


def linear_crf_decode(x, transition, mask, context: NlpContext = NlpContext(),
                      *, emission_dtype=jnp.bfloat16):
    B, S, L = x.shape
    transition = jnp.asarray(transition, jnp.float32)
    mask_i32 = jnp.asarray(mask, jnp.int32)
    bos, eos, pad = context.bos_idx, context.eos_idx, context.padding_idx

    B_TILE = LANES
    B_pad = _round_up(B, B_TILE)

    # Time-chunk size: a multiple of 8 sublanes; S is padded (mask=0) to a multiple of it.
    S_chunk = _round_up(S, 8) if S <= 64 else 64
    S_pad = _round_up(S, S_chunk)

    # Backpointer dtype: narrow only when the (32,128)/(16,128) sublane-packing tiles
    # actually save VMEM (otherwise padding eats the savings).
    if 32 <= L <= 128:
        bp_dtype = jnp.int8
    elif 16 <= L <= 32767:
        bp_dtype = jnp.int16
    else:
        bp_dtype = jnp.int32

    # Emissions travel over HBM in a narrow dtype, batch on lanes, tags on sublanes.
    xT = jnp.transpose(x.astype(emission_dtype), (1, 2, 0))          # (S, L, B)
    xT = jnp.pad(xT, ((0, S_pad - S), (0, 0), (0, B_pad - B)))       # (S_pad, L, B_pad)
    maskT = jnp.pad(mask_i32.T, ((0, S_pad - S), (0, B_pad - B)))    # (S_pad, B_pad)
    transT = transition.T                                            # (to, from)

    time_unroll = max(1, min(8, S_chunk))
    bt_unroll = max(1, min(8, S_pad - 1))
    kernel = _make_viterbi_kernel(S_pad, S_chunk, L, B_TILE, bos, eos,
                                  bp_dtype, time_unroll, bt_unroll)

    grid = (B_pad // B_TILE, S_pad // S_chunk)   # (parallel batch tiles, arbitrary time chunks)
    grid_spec = pltpu.PrefetchScalarGridSpec(
        num_scalar_prefetch=0,
        grid=grid,
        in_specs=[
            pl.BlockSpec((S_chunk, B_TILE), lambda i, t: (t, i)),        # mask chunk
            pl.BlockSpec((S_chunk, L, B_TILE), lambda i, t: (t, 0, i)),  # emissions chunk
            pl.BlockSpec((L, L), lambda i, t: (0, 0)),                   # transition[from, to]
            pl.BlockSpec((L, L), lambda i, t: (0, 0)),                   # transition^T[to, from]
        ],
        out_specs=[
            pl.BlockSpec((S_pad, B_TILE), lambda i, t: (0, i)),          # path^T, resident over t
            pl.BlockSpec((1, B_TILE), lambda i, t: (0, i)),              # score,  resident over t
        ],
        scratch_shapes=[
            pltpu.VMEM((S_pad, L, B_TILE), bp_dtype),                    # backpointers (full S)
            pltpu.VMEM((L, B_TILE), jnp.float32),                        # alpha across chunks
        ],
    )

    pathT, score_row = pl.pallas_call(
        kernel,
        grid_spec=grid_spec,
        out_shape=(
            jax.ShapeDtypeStruct((S_pad, B_pad), jnp.int32),
            jax.ShapeDtypeStruct((1, B_pad), jnp.float32),
        ),
        compiler_params=pltpu.CompilerParams(
            dimension_semantics=("parallel", "arbitrary"),
            # Raise the scoped-VMEM limit explicitly; 48 MiB is safe on v5e/v6e (128 MiB)
            # and leaves headroom on v7x (64 MiB physical).
            vmem_limit_bytes=48 * 1024 * 1024,
        ),
    )(maskT, xT, transition, transT)

    path = pathT[:S, :B].T                  # (B, S)
    score = score_row[0, :B]                # (B,)
    # TODO(synk): torchlake's exact viterbi_decode padding-output convention is unknown;
    # padded positions are reported as padding_idx here.
    path = jnp.where(mask_i32 != 0, path, pad)
    return path, score


class LinearCRF:
    """CRF layer: forward = Viterbi decode with learned transition matrix."""

    def __init__(self, output_size: int, context: NlpContext = NlpContext(),
                 key=jax.random.PRNGKey(0)):
        self.context = context
        MUST_NOT, MUST_HAPPEN = -3.0, 3.0
        bos, eos, pad = context.bos_idx, context.eos_idx, context.padding_idx
        t = jax.random.normal(key, (output_size, output_size), jnp.float32)
        # same constraint order as the PyTorch __init__
        t = t.at[bos, jnp.array([bos, eos, pad])].set(MUST_NOT)
        t = t.at[:, bos].set(MUST_NOT)
        t = t.at[:, pad].set(MUST_NOT)
        t = t.at[eos, pad].set(MUST_HAPPEN)
        t = t.at[pad, pad].set(MUST_HAPPEN)
        self.transition = t

    def __call__(self, x, mask=None, output_score: bool = False):
        if mask is None:
            mask = jnp.ones(x.shape[:2], jnp.int32)
        path, score = linear_crf_decode(x, self.transition, mask, self.context)
        return (path, score) if output_score else path


def _viterbi_ref(x, trans, mask, ctx: NlpContext):
    """Pure NumPy reference for the same Viterbi semantics."""
    x = np.asarray(x, np.float32)
    trans = np.asarray(trans, np.float32)
    mask = np.asarray(mask)
    B, S, L = x.shape
    bos, eos, pad = ctx.bos_idx, ctx.eos_idx, ctx.padding_idx

    alpha = trans[bos][None, :] + x[:, 0]
    bps = np.zeros((B, S, L), np.int64)
    for t in range(1, S):
        cand = alpha[:, :, None] + trans[None, :, :]       # (B, from, to)
        best = cand.max(axis=1)
        bp = cand.argmax(axis=1)
        m = mask[:, t:t + 1] != 0
        alpha = np.where(m, best + x[:, t], alpha)
        bps[:, t] = np.where(m, bp, np.arange(L)[None, :])
    final = alpha + trans[:, eos][None, :]
    score = final.max(axis=1)
    cur = final.argmax(axis=1)
    path = np.zeros((B, S), np.int64)
    path[:, S - 1] = cur
    for t in range(S - 1, 0, -1):
        cur = bps[np.arange(B), t, cur]
        path[:, t - 1] = cur
    path = np.where(mask != 0, path, pad)
    return path, score


if __name__ == "__main__":
    B, S, L = 2, 8, 8          # batch, seq_len, label_size (output_size)
    ctx = NlpContext()
    key = jax.random.PRNGKey(0)
    k_x, k_t = jax.random.split(key)

    x = jax.random.normal(k_x, (B, S, L), jnp.float32)
    lengths = jnp.array([8, 5], jnp.int32)
    mask = (jnp.arange(S)[None, :] < lengths[:, None]).astype(jnp.int32)

    model = LinearCRF(L, ctx, key=k_t)
    path, score = model(x, mask, output_score=True)
    path = jax.block_until_ready(path)
    score = jax.block_until_ready(score)

    # Reference is computed on the same bf16-quantized emissions the kernel consumes
    # (emissions are carried over HBM as bfloat16; all accumulation is f32).
    x_q = np.asarray(jnp.asarray(x).astype(jnp.bfloat16).astype(jnp.float32))
    ref_path, ref_score = _viterbi_ref(x_q, model.transition, mask, ctx)
    assert np.array_equal(np.asarray(path), ref_path), (path, ref_path)
    assert np.allclose(np.asarray(score), ref_score, rtol=1e-5, atol=1e-5), (score, ref_score)

    print("KERNEL_OK")
</pallas_src>

<mosaic_0001>
module attributes {stable_mosaic.version = 11 : i64} {
  func.func @kernel(%arg0: i32, %arg1: i32, %arg2: memref<8x128xi32, #tpu.memory_space<vmem>>, %arg3: memref<8x8x128xbf16, #tpu.memory_space<vmem>>, %arg4: memref<8x8xf32, #tpu.memory_space<vmem>>, %arg5: memref<8x8xf32, #tpu.memory_space<vmem>>, %arg6: memref<8x128xi32, #tpu.memory_space<vmem>>, %arg7: memref<1x128xf32, #tpu.memory_space<vmem>>, %arg8: memref<8x8x128xi32, #tpu.memory_space<vmem>>, %arg9: memref<8x128xf32, #tpu.memory_space<vmem>>) attributes {dimension_semantics = [#tpu.dimension_semantics<parallel>, #tpu.dimension_semantics<arbitrary>], iteration_bounds = array<i64: 1, 1>, scalar_prefetch = 0 : i64, scratch_operands = 2 : i64, tpu.core_type = #tpu.core_type<tc>, window_params = [{transform_indices = @transform_0, window_bounds = array<i64: 8, 128>}, {transform_indices = @transform_1, window_bounds = array<i64: 8, 8, 128>}, {pipeline_mode = #tpu.pipeline_mode<synchronous>, transform_indices = @transform_2, window_bounds = array<i64: 8, 8>}, {pipeline_mode = #tpu.pipeline_mode<synchronous>, transform_indices = @transform_3, window_bounds = array<i64: 8, 8>}, {transform_indices = @transform_4, window_bounds = array<i64: 8, 128>}, {transform_indices = @transform_5, window_bounds = array<i64: 1, 128>}]} {
    %c8_i32 = arith.constant 8 : i32
    %0 = arith.muli %arg1, %c8_i32 : i32
    %1 = tpu.iota {dimensions = array<i32: 0>} : vector<8x128xi32>
    %c0 = arith.constant 0 : index
    %c0_0 = arith.constant 0 : index
    %2 = vector.load %arg5[%c0, %c0_0] : memref<8x8xf32, #tpu.memory_space<vmem>>, vector<8x8xf32>
    %3 = vector.extract_strided_slice %2 {offsets = [0, 0], sizes = [8, 1], strides = [1, 1]} : vector<8x8xf32> to vector<8x1xf32>
    %4 = vector.shape_cast %3 : vector<8x1xf32> to vector<8x1xf32>
    %5 = vector.broadcast %4 : vector<8x1xf32> to vector<8x128xf32>
    %6 = vector.extract_strided_slice %2 {offsets = [0, 1], sizes = [8, 1], strides = [1, 1]} : vector<8x8xf32> to vector<8x1xf32>
    %7 = vector.shape_cast %6 : vector<8x1xf32> to vector<8x1xf32>
    %8 = vector.broadcast %7 : vector<8x1xf32> to vector<8x128xf32>
    %9 = vector.extract_strided_slice %2 {offsets = [0, 2], sizes = [8, 1], strides = [1, 1]} : vector<8x8xf32> to vector<8x1xf32>
    %10 = vector.shape_cast %9 : vector<8x1xf32> to vector<8x1xf32>
    %11 = vector.broadcast %10 : vector<8x1xf32> to vector<8x128xf32>
    %12 = vector.extract_strided_slice %2 {offsets = [0, 3], sizes = [8, 1], strides = [1, 1]} : vector<8x8xf32> to vector<8x1xf32>
    %13 = vector.shape_cast %12 : vector<8x1xf32> to vector<8x1xf32>
    %14 = vector.broadcast %13 : vector<8x1xf32> to vector<8x128xf32>
    %15 = vector.extract_strided_slice %2 {offsets = [0, 4], sizes = [8, 1], strides = [1, 1]} : vector<8x8xf32> to vector<8x1xf32>
    %16 = vector.shape_cast %15 : vector<8x1xf32> to vector<8x1xf32>
    %17 = vector.broadcast %16 : vector<8x1xf32> to vector<8x128xf32>
    %18 = vector.extract_strided_slice %2 {offsets = [0, 5], sizes = [8, 1], strides = [1, 1]} : vector<8x8xf32> to vector<8x1xf32>
    %19 = vector.shape_cast %18 : vector<8x1xf32> to vector<8x1xf32>
    %20 = vector.broadcast %19 : vector<8x1xf32> to vector<8x128xf32>
    %21 = vector.extract_strided_slice %2 {offsets = [0, 6], sizes = [8, 1], strides = [1, 1]} : vector<8x8xf32> to vector<8x1xf32>
    %22 = vector.shape_cast %21 : vector<8x1xf32> to vector<8x1xf32>
    %23 = vector.broadcast %22 : vector<8x1xf32> to vector<8x128xf32>
    %24 = vector.extract_strided_slice %2 {offsets = [0, 7], sizes = [8, 1], strides = [1, 1]} : vector<8x8xf32> to vector<8x1xf32>
    %25 = vector.shape_cast %24 : vector<8x1xf32> to vector<8x1xf32>
    %26 = vector.broadcast %25 : vector<8x1xf32> to vector<8x128xf32>
    %c0_i32 = arith.constant 0 : i32
    %27 = arith.addi %0, %c0_i32 : i32
    %28 = arith.index_cast %c0_i32 : i32 to index
    %c0_1 = arith.constant 0 : index
    %c0_2 = arith.constant 0 : index
    %29 = vector.load %arg3[%28, %c0_1, %c0_2] : memref<8x8x128xbf16, #tpu.memory_space<vmem>>, vector<1x8x128xbf16>
    %30 = vector.shape_cast %29 : vector<1x8x128xbf16> to vector<8x128xbf16>
    %31 = arith.extf %30 : vector<8x128xbf16> to vector<8x128xf32>
    %32 = arith.index_cast %c0_i32 : i32 to index
    %c0_3 = arith.constant 0 : index
    %33 = vector.load %arg2[%32, %c0_3] : memref<8x128xi32, #tpu.memory_space<vmem>>, vector<1x128xi32>
    %c0_i32_4 = arith.constant 0 : i32
    %34 = vector.broadcast %c0_i32_4 : i32 to vector<1x128xi32>
    %35 = arith.cmpi ne, %33, %34 : vector<1x128xi32>
    %c0_i32_5 = arith.constant 0 : i32
    %36 = arith.cmpi eq, %27, %c0_i32_5 : i32
    %37 = arith.extui %36 : i1 to i32
    %c0_i32_6 = arith.constant 0 : i32
    %38 = arith.cmpi ne, %37, %c0_i32_6 : i32
    scf.if %38 {
      %150 = arith.addf %8, %31 : vector<8x128xf32>
      %c0_68 = arith.constant 0 : index
      %c0_69 = arith.constant 0 : index
      %151 = vector.load %arg9[%c0_68, %c0_69] : memref<8x128xf32, #tpu.memory_space<vmem>>, vector<8x128xf32>
      tpu.vector_store %arg9[%c0_68, %c0_69], %150 {strides = array<i32>} : memref<8x128xf32, #tpu.memory_space<vmem>>, vector<8x128xf32>,
    } else {
    }
    %c0_i32_7 = arith.constant 0 : i32
    %39 = arith.cmpi sgt, %27, %c0_i32_7 : i32
    %40 = arith.extui %39 : i1 to i32
    %c0_i32_8 = arith.constant 0 : i32
    %41 = arith.cmpi ne, %40, %c0_i32_8 : i32
    scf.if %41 {
      %c0_68 = arith.constant 0 : index
      %c0_69 = arith.constant 0 : index
      %150 = vector.load %arg9[%c0_68, %c0_69] : memref<8x128xf32, #tpu.memory_space<vmem>>, vector<8x128xf32>
      %151 = vector.extract_strided_slice %150 {offsets = [0, 0], sizes = [1, 128], strides = [1, 1]} : vector<8x128xf32> to vector<1x128xf32>
      %152 = vector.broadcast %151 : vector<1x128xf32> to vector<8x128xf32>
      %153 = arith.addf %5, %152 : vector<8x128xf32>
      %c0_i32_70 = arith.constant 0 : i32
      %154 = vector.broadcast %c0_i32_70 : i32 to vector<8x128xi32>
      %155 = vector.extract_strided_slice %150 {offsets = [1, 0], sizes = [1, 128], strides = [1, 1]} : vector<8x128xf32> to vector<1x128xf32>
      %156 = vector.broadcast %155 : vector<1x128xf32> to vector<8x128xf32>
      %157 = arith.addf %8, %156 : vector<8x128xf32>
      %158 = arith.cmpf ogt, %157, %153 : vector<8x128xf32>
      %c1_i32_71 = arith.constant 1 : i32
      %159 = vector.broadcast %c1_i32_71 : i32 to vector<8x128xi32>
      %160 = arith.select %158, %159, %154 : vector<8x128xi1>, vector<8x128xi32>
      %161 = arith.maximumf %153, %157 : vector<8x128xf32>
      %162 = vector.extract_strided_slice %150 {offsets = [2, 0], sizes = [1, 128], strides = [1, 1]} : vector<8x128xf32> to vector<1x128xf32>
      %163 = vector.broadcast %162 : vector<1x128xf32> to vector<8x128xf32>
      %164 = arith.addf %11, %163 : vector<8x128xf32>
      %165 = arith.cmpf ogt, %164, %161 : vector<8x128xf32>
      %c2_i32_72 = arith.constant 2 : i32
      %166 = vector.broadcast %c2_i32_72 : i32 to vector<8x128xi32>
      %167 = arith.select %165, %166, %160 : vector<8x128xi1>, vector<8x128xi32>
      %168 = arith.maximumf %161, %164 : vector<8x128xf32>
      %169 = vector.extract_strided_slice %150 {offsets = [3, 0], sizes = [1, 128], strides = [1, 1]} : vector<8x128xf32> to vector<1x128xf32>
      %170 = vector.broadcast %169 : vector<1x128xf32> to vector<8x128xf32>
      %171 = arith.addf %14, %170 : vector<8x128xf32>
      %172 = arith.cmpf ogt, %171, %168 : vector<8x128xf32>
      %c3_i32_73 = arith.constant 3 : i32
      %173 = vector.broadcast %c3_i32_73 : i32 to vector<8x128xi32>
      %174 = arith.select %172, %173, %167 : vector<8x128xi1>, vector<8x128xi32>
      %175 = arith.maximumf %168, %171 : vector<8x128xf32>
      %176 = vector.extract_strided_slice %150 {offsets = [4, 0], sizes = [1, 128], strides = [1, 1]} : vector<8x128xf32> to vector<1x128xf32>
      %177 = vector.broadcast %176 : vector<1x128xf32> to vector<8x128xf32>
      %178 = arith.addf %17, %177 : vector<8x128xf32>
      %179 = arith.cmpf ogt, %178, %175 : vector<8x128xf32>
      %c4_i32_74 = arith.constant 4 : i32
      %180 = vector.broadcast %c4_i32_74 : i32 to vector<8x128xi32>
      %181 = arith.select %179, %180, %174 : vector<8x128xi1>, vector<8x128xi32>
      %182 = arith.maximumf %175, %178 : vector<8x128xf32>
      %183 = vector.extract_strided_slice %150 {offsets = [5, 0], sizes = [1, 128], strides = [1, 1]} : vector<8x128xf32> to vector<1x128xf32>
      %184 = vector.broadcast %183 : vector<1x128xf32> to vector<8x128xf32>
      %185 = arith.addf %20, %184 : vector<8x128xf32>
      %186 = arith.cmpf ogt, %185, %182 : vector<8x128xf32>
      %c5_i32_75 = arith.constant 5 : i32
      %187 = vector.broadcast %c5_i32_75 : i32 to vector<8x128xi32>
      %188 = arith.select %186, %187, %181 : vector<8x128xi1>, vector<8x128xi32>
      %189 = arith.maximumf %182, %185 : vector<8x128xf32>
      %190 = vector.extract_strided_slice %150 {offsets = [6, 0], sizes = [1, 128], strides = [1, 1]} : vector<8x128xf32> to vector<1x128xf32>
      %191 = vector.broadcast %190 : vector<1x128xf32> to vector<8x128xf32>
      %192 = arith.addf %23, %191 : vector<8x128xf32>
      %193 = arith.cmpf ogt, %192, %189 : vector<8x128xf32>
      %c6_i32_76 = arith.constant 6 : i32
      %194 = vector.broadcast %c6_i32_76 : i32 to vector<8x128xi32>
      %195 = arith.select %193, %194, %188 : vector<8x128xi1>, vector<8x128xi32>
      %196 = arith.maximumf %189, %192 : vector<8x128xf32>
      %197 = vector.extract_strided_slice %150 {offsets = [7, 0], sizes = [1, 128], strides = [1, 1]} : vector<8x128xf32> to vector<1x128xf32>
      %198 = vector.broadcast %197 : vector<1x128xf32> to vector<8x128xf32>
      %199 = arith.addf %26, %198 : vector<8x128xf32>
      %200 = arith.cmpf ogt, %199, %196 : vector<8x128xf32>
      %c7_i32_77 = arith.constant 7 : i32
      %201 = vector.broadcast %c7_i32_77 : i32 to vector<8x128xi32>
      %202 = arith.select %200, %201, %195 : vector<8x128xi1>, vector<8x128xi32>
      %203 = arith.maximumf %196, %199 : vector<8x128xf32>
      %204 = vector.shape_cast %35 : vector<1x128xi1> to vector<1x128xi1>
      %205 = vector.broadcast %204 : vector<1x128xi1> to vector<8x128xi1>
      %206 = arith.select %205, %202, %1 : vector<8x128xi1>, vector<8x128xi32>
      %207 = arith.index_cast %27 : i32 to index
      %c0_78 = arith.constant 0 : index
      %c0_79 = arith.constant 0 : index
      %208 = vector.load %arg8[%207, %c0_78, %c0_79] : memref<8x8x128xi32, #tpu.memory_space<vmem>>, vector<1x8x128xi32>
      %209 = vector.shape_cast %208 : vector<1x8x128xi32> to vector<8x128xi32>
      %210 = vector.shape_cast %206 : vector<8x128xi32> to vector<1x8x128xi32>
      tpu.vector_store %arg8[%207, %c0_78, %c0_79], %210 {strides = array<i32>} : memref<8x8x128xi32, #tpu.memory_space<vmem>>, vector<1x8x128xi32>,
      %211 = arith.addf %203, %31 : vector<8x128xf32>
      %212 = vector.shape_cast %35 : vector<1x128xi1> to vector<1x128xi1>
      %213 = vector.broadcast %212 : vector<1x128xi1> to vector<8x128xi1>
      %214 = arith.select %213, %211, %150 : vector<8x128xi1>, vector<8x128xf32>
      %c0_80 = arith.constant 0 : index
      %c0_81 = arith.constant 0 : index
      %215 = vector.load %arg9[%c0_80, %c0_81] : memref<8x128xf32, #tpu.memory_space<vmem>>, vector<8x128xf32>
      tpu.vector_store %arg9[%c0_80, %c0_81], %214 {strides = array<i32>} : memref<8x128xf32, #tpu.memory_space<vmem>>, vector<8x128xf32>,
    } else {
    }
    %c1_i32 = arith.constant 1 : i32
    %42 = arith.addi %0, %c1_i32 : i32
    %43 = arith.index_cast %c1_i32 : i32 to index
    %c0_9 = arith.constant 0 : index
    %c0_10 = arith.constant 0 : index
    %44 = vector.load %arg3[%43, %c0_9, %c0_10] : memref<8x8x128xbf16, #tpu.memory_space<vmem>>, vector<1x8x128xbf16>
    %45 = vector.shape_cast %44 : vector<1x8x128xbf16> to vector<8x128xbf16>
    %46 = arith.extf %45 : vector<8x128xbf16> to vector<8x128xf32>
    %47 = arith.index_cast %c1_i32 : i32 to index
    %c0_11 = arith.constant 0 : index
    %48 = vector.load %arg2[%47, %c0_11] : memref<8x128xi32, #tpu.memory_space<vmem>>, vector<1x128xi32>
    %c0_i32_12 = arith.constant 0 : i32
    %49 = vector.broadcast %c0_i32_12 : i32 to vector<1x128xi32>
    %50 = arith.cmpi ne, %48, %49 : vector<1x128xi32>
    %c0_i32_13 = arith.constant 0 : i32
    %51 = arith.cmpi eq, %42, %c0_i32_13 : i32
    %52 = arith.extui %51 : i1 to i32
    %c0_i32_14 = arith.constant 0 : i32
    %53 = arith.cmpi ne, %52, %c0_i32_14 : i32
    scf.if %53 {
      %150 = arith.addf %8, %46 : vector<8x128xf32>
      %c0_68 = arith.constant 0 : index
      %c0_69 = arith.constant 0 : index
      %151 = vector.load %arg9[%c0_68, %c0_69] : memref<8x128xf32, #tpu.memory_space<vmem>>, vector<8x128xf32>
      tpu.vector_store %arg9[%c0_68, %c0_69], %150 {strides = array<i32>} : memref<8x128xf32, #tpu.memory_space<vmem>>, vector<8x128xf32>,
    } else {
    }
    %c0_i32_15 = arith.constant 0 : i32
    %54 = arith.cmpi sgt, %42, %c0_i32_15 : i32
    %55 = arith.extui %54 : i1 to i32
    %c0_i32_16 = arith.constant 0 : i32
    %56 = arith.cmpi ne, %55, %c0_i32_16 : i32
    scf.if %56 {
      %c0_68 = arith.constant 0 : index
      %c0_69 = arith.constant 0 : index
      %150 = vector.load %arg9[%c0_68, %c0_69] : memref<8x128xf32, #tpu.memory_space<vmem>>, vector<8x128xf32>
      %151 = vector.extract_strided_slice %150 {offsets = [0, 0], sizes = [1, 128], strides = [1, 1]} : vector<8x128xf32> to vector<1x128xf32>
      %152 = vector.broadcast %151 : vector<1x128xf32> to vector<8x128xf32>
      %153 = arith.addf %5, %152 : vector<8x128xf32>
      %c0_i32_70 = arith.constant 0 : i32
      %154 = vector.broadcast %c0_i32_70 : i32 to vector<8x128xi32>
      %155 = vector.extract_strided_slice %150 {offsets = [1, 0], sizes = [1, 128], strides = [1, 1]} : vector<8x128xf32> to vector<1x128xf32>
      %156 = vector.broadcast %155 : vector<1x128xf32> to vector<8x128xf32>
      %157 = arith.addf %8, %156 : vector<8x128xf32>
      %158 = arith.cmpf ogt, %157, %153 : vector<8x128xf32>
      %c1_i32_71 = arith.constant 1 : i32
      %159 = vector.broadcast %c1_i32_71 : i32 to vector<8x128xi32>
      %160 = arith.select %158, %159, %154 : vector<8x128xi1>, vector<8x128xi32>
      %161 = arith.maximumf %153, %157 : vector<8x128xf32>
      %162 = vector.extract_strided_slice %150 {offsets = [2, 0], sizes = [1, 128], strides = [1, 1]} : vector<8x128xf32> to vector<1x128xf32>
      %163 = vector.broadcast %162 : vector<1x128xf32> to vector<8x128xf32>
      %164 = arith.addf %11, %163 : vector<8x128xf32>
      %165 = arith.cmpf ogt, %164, %161 : vector<8x128xf32>
      %c2_i32_72 = arith.constant 2 : i32
      %166 = vector.broadcast %c2_i32_72 : i32 to vector<8x128xi32>
      %167 = arith.select %165, %166, %160 : vector<8x128xi1>, vector<8x128xi32>
      %168 = arith.maximumf %161, %164 : vector<8x128xf32>
      %169 = vector.extract_strided_slice %150 {offsets = [3, 0], sizes = [1, 128], strides = [1, 1]} : vector<8x128xf32> to vector<1x128xf32>
      %170 = vector.broadcast %169 : vector<1x128xf32> to vector<8x128xf32>
      %171 = arith.addf %14, %170 : vector<8x128xf32>
      %172 = arith.cmpf ogt, %171, %168 : vector<8x128xf32>
      %c3_i32_73 = arith.constant 3 : i32
      %173 = vector.broadcast %c3_i32_73 : i32 to vector<8x128xi32>
      %174 = arith.select %172, %173, %167 : vector<8x128xi1>, vector<8x128xi32>
      %175 = arith.maximumf %168, %171 : vector<8x128xf32>
      %176 = vector.extract_strided_slice %150 {offsets = [4, 0], sizes = [1, 128], strides = [1, 1]} : vector<8x128xf32> to vector<1x128xf32>
      %177 = vector.broadcast %176 : vector<1x128xf32> to vector<8x128xf32>
      %178 = arith.addf %17, %177 : vector<8x128xf32>
      %179 = arith.cmpf ogt, %178, %175 : vector<8x128xf32>
      %c4_i32_74 = arith.constant 4 : i32
      %180 = vector.broadcast %c4_i32_74 : i32 to vector<8x128xi32>
      %181 = arith.select %179, %180, %174 : vector<8x128xi1>, vector<8x128xi32>
      %182 = arith.maximumf %175, %178 : vector<8x128xf32>
      %183 = vector.extract_strided_slice %150 {offsets = [5, 0], sizes = [1, 128], strides = [1, 1]} : vector<8x128xf32> to vector<1x128xf32>
      %184 = vector.broadcast %183 : vector<1x128xf32> to vector<8x128xf32>
      %185 = arith.addf %20, %184 : vector<8x128xf32>
      %186 = arith.cmpf ogt, %185, %182 : vector<8x128xf32>
      %c5_i32_75 = arith.constant 5 : i32
      %187 = vector.broadcast %c5_i32_75 : i32 to vector<8x128xi32>
      %188 = arith.select %186, %187, %181 : vector<8x128xi1>, vector<8x128xi32>
      %189 = arith.maximumf %182, %185 : vector<8x128xf32>
      %190 = vector.extract_strided_slice %150 {offsets = [6, 0], sizes = [1, 128], strides = [1, 1]} : vector<8x128xf32> to vector<1x128xf32>
      %191 = vector.broadcast %190 : vector<1x128xf32> to vector<8x128xf32>
      %192 = arith.addf %23, %191 : vector<8x128xf32>
      %193 = arith.cmpf ogt, %192, %189 : vector<8x128xf32>
      %c6_i32_76 = arith.constant 6 : i32
      %194 = vector.broadcast %c6_i32_76 : i32 to vector<8x128xi32>
      %195 = arith.select %193, %194, %188 : vector<8x128xi1>, vector<8x128xi32>
      %196 = arith.maximumf %189, %192 : vector<8x128xf32>
      %197 = vector.extract_strided_slice %150 {offsets = [7, 0], sizes = [1, 128], strides = [1, 1]} : vector<8x128xf32> to vector<1x128xf32>
      %198 = vector.broadcast %197 : vector<1x128xf32> to vector<8x128xf32>
      %199 = arith.addf %26, %198 : vector<8x128xf32>
      %200 = arith.cmpf ogt, %199, %196 : vector<8x128xf32>
      %c7_i32_77 = arith.constant 7 : i32
      %201 = vector.broadcast %c7_i32_77 : i32 to vector<8x128xi32>
      %202 = arith.select %200, %201, %195 : vector<8x128xi1>, vector<8x128xi32>
      %203 = arith.maximumf %196, %199 : vector<8x128xf32>
      %204 = vector.shape_cast %50 : vector<1x128xi1> to vector<1x128xi1>
      %205 = vector.broadcast %204 : vector<1x128xi1> to vector<8x128xi1>
      %206 = arith.select %205, %202, %1 : vector<8x128xi1>, vector<8x128xi32>
      %207 = arith.index_cast %42 : i32 to index
      %c0_78 = arith.constant 0 : index
      %c0_79 = arith.constant 0 : index
      %208 = vector.load %arg8[%207, %c0_78, %c0_79] : memref<8x8x128xi32, #tpu.memory_space<vmem>>, vector<1x8x128xi32>
      %209 = vector.shape_cast %208 : vector<1x8x128xi32> to vector<8x128xi32>
      %210 = vector.shape_cast %206 : vector<8x128xi32> to vector<1x8x128xi32>
      tpu.vector_store %arg8[%207, %c0_78, %c0_79], %210 {strides = array<i32>} : memref<8x8x128xi32, #tpu.memory_space<vmem>>, vector<1x8x128xi32>,
      %211 = arith.addf %203, %46 : vector<8x128xf32>
      %212 = vector.shape_cast %50 : vector<1x128xi1> to vector<1x128xi1>
      %213 = vector.broadcast %212 : vector<1x128xi1> to vector<8x128xi1>
      %214 = arith.select %213, %211, %150 : vector<8x128xi1>, vector<8x128xf32>
      %c0_80 = arith.constant 0 : index
      %c0_81 = arith.constant 0 : index
      %215 = vector.load %arg9[%c0_80, %c0_81] : memref<8x128xf32, #tpu.memory_space<vmem>>, vector<8x128xf32>
      tpu.vector_store %arg9[%c0_80, %c0_81], %214 {strides = array<i32>} : memref<8x128xf32, #tpu.memory_space<vmem>>, vector<8x128xf32>,
    } else {
    }
    %c2_i32 = arith.constant 2 : i32
    %57 = arith.addi %0, %c2_i32 : i32
    %58 = arith.index_cast %c2_i32 : i32 to index
    %c0_17 = arith.constant 0 : index
    %c0_18 = arith.constant 0 : index
    %59 = vector.load %arg3[%58, %c0_17, %c0_18] : memref<8x8x128xbf16, #tpu.memory_space<vmem>>, vector<1x8x128xbf16>
    %60 = vector.shape_cast %59 : vector<1x8x128xbf16> to vector<8x128xbf16>
    %61 = arith.extf %60 : vector<8x128xbf16> to vector<8x128xf32>
    %62 = arith.index_cast %c2_i32 : i32 to index
    %c0_19 = arith.constant 0 : index
    %63 = vector.load %arg2[%62, %c0_19] : memref<8x128xi32, #tpu.memory_space<vmem>>, vector<1x128xi32>
    %c0_i32_20 = arith.constant 0 : i32
    %64 = vector.broadcast %c0_i32_20 : i32 to vector<1x128xi32>
    %65 = arith.cmpi ne, %63, %64 : vector<1x128xi32>
    %c0_i32_21 = arith.constant 0 : i32
    %66 = arith.cmpi eq, %57, %c0_i32_21 : i32
    %67 = arith.extui %66 : i1 to i32
    %c0_i32_22 = arith.constant 0 : i32
    %68 = arith.cmpi ne, %67, %c0_i32_22 : i32
    scf.if %68 {
      %150 = arith.addf %8, %61 : vector<8x128xf32>
      %c0_68 = arith.constant 0 : index
      %c0_69 = arith.constant 0 : index
      %151 = vector.load %arg9[%c0_68, %c0_69] : memref<8x128xf32, #tpu.memory_space<vmem>>, vector<8x128xf32>
      tpu.vector_store %arg9[%c0_68, %c0_69], %150 {strides = array<i32>} : memref<8x128xf32, #tpu.memory_space<vmem>>, vector<8x128xf32>,
    } else {
    }
    %c0_i32_23 = arith.constant 0 : i32
    %69 = arith.cmpi sgt, %57, %c0_i32_23 : i32
    %70 = arith.extui %69 : i1 to i32
    %c0_i32_24 = arith.constant 0 : i32
    %71 = arith.cmpi ne, %70, %c0_i32_24 : i32
    scf.if %71 {
      %c0_68 = arith.constant 0 : index
      %c0_69 = arith.constant 0 : index
      %150 = vector.load %arg9[%c0_68, %c0_69] : memref<8x128xf32, #tpu.memory_space<vmem>>, vector<8x128xf32>
      %151 = vector.extract_strided_slice %150 {offsets = [0, 0], sizes = [1, 128], strides = [1, 1]} : vector<8x128xf32> to vector<1x128xf32>
      %152 = vector.broadcast %151 : vector<1x128xf32> to vector<8x128xf32>
      %153 = arith.addf %5, %152 : vector<8x128xf32>
      %c0_i32_70 = arith.constant 0 : i32
      %154 = vector.broadcast %c0_i32_70 : i32 to vector<8x128xi32>
      %155 = vector.extract_strided_slice %150 {offsets = [1, 0], sizes = [1, 128], strides = [1, 1]} : vector<8x128xf32> to vector<1x128xf32>
      %156 = vector.broadcast %155 : vector<1x128xf32> to vector<8x128xf32>
      %157 = arith.addf %8, %156 : vector<8x128xf32>
      %158 = arith.cmpf ogt, %157, %153 : vector<8x128xf32>
      %c1_i32_71 = arith.constant 1 : i32
      %159 = vector.broadcast %c1_i32_71 : i32 to vector<8x128xi32>
      %160 = arith.select %158, %159, %154 : vector<8x128xi1>, vector<8x128xi32>
      %161 = arith.maximumf %153, %157 : vector<8x128xf32>
      %162 = vector.extract_strided_slice %150 {offsets = [2, 0], sizes = [1, 128], strides = [1, 1]} : vector<8x128xf32> to vector<1x128xf32>
      %163 = vector.broadcast %162 : vector<1x128xf32> to vector<8x128xf32>
      %164 = arith.addf %11, %163 : vector<8x128xf32>
      %165 = arith.cmpf ogt, %164, %161 : vector<8x128xf32>
      %c2_i32_72 = arith.constant 2 : i32
      %166 = vector.broadcast %c2_i32_72 : i32 to vector<8x128xi32>
      %167 = arith.select %165, %166, %160 : vector<8x128xi1>, vector<8x128xi32>
      %168 = arith.maximumf %161, %164 : vector<8x128xf32>
      %169 = vector.extract_strided_slice %150 {offsets = [3, 0], sizes = [1, 128], strides = [1, 1]} : vector<8x128xf32> to vector<1x128xf32>
      %170 = vector.broadcast %169 : vector<1x128xf32> to vector<8x128xf32>
      %171 = arith.addf %14, %170 : vector<8x128xf32>
      %172 = arith.cmpf ogt, %171, %168 : vector<8x128xf32>
      %c3_i32_73 = arith.constant 3 : i32
      %173 = vector.broadcast %c3_i32_73 : i32 to vector<8x128xi32>
      %174 = arith.select %172, %173, %167 : vector<8x128xi1>, vector<8x128xi32>
      %175 = arith.maximumf %168, %171 : vector<8x128xf32>
      %176 = vector.extract_strided_slice %150 {offsets = [4, 0], sizes = [1, 128], strides = [1, 1]} : vector<8x128xf32> to vector<1x128xf32>
      %177 = vector.broadcast %176 : vector<1x128xf32> to vector<8x128xf32>
      %178 = arith.addf %17, %177 : vector<8x128xf32>
      %179 = arith.cmpf ogt, %178, %175 : vector<8x128xf32>
      %c4_i32_74 = arith.constant 4 : i32
      %180 = vector.broadcast %c4_i32_74 : i32 to vector<8x128xi32>
      %181 = arith.select %179, %180, %174 : vector<8x128xi1>, vector<8x128xi32>
      %182 = arith.maximumf %175, %178 : vector<8x128xf32>
      %183 = vector.extract_strided_slice %150 {offsets = [5, 0], sizes = [1, 128], strides = [1, 1]} : vector<8x128xf32> to vector<1x128xf32>
      %184 = vector.broadcast %183 : vector<1x128xf32> to vector<8x128xf32>
      %185 = arith.addf %20, %184 : vector<8x128xf32>
      %186 = arith.cmpf ogt, %185, %182 : vector<8x128xf32>
      %c5_i32_75 = arith.constant 5 : i32
      %187 = vector.broadcast %c5_i32_75 : i32 to vector<8x128xi32>
      %188 = arith.select %186, %187, %181 : vector<8x128xi1>, vector<8x128xi32>
      %189 = arith.maximumf %182, %185 : vector<8x128xf32>
      %190 = vector.extract_strided_slice %150 {offsets = [6, 0], sizes = [1, 128], strides = [1, 1]} : vector<8x128xf32> to vector<1x128xf32>
      %191 = vector.broadcast %190 : vector<1x128xf32> to vector<8x128xf32>
      %192 = arith.addf %23, %191 : vector<8x128xf32>
      %193 = arith.cmpf ogt, %192, %189 : vector<8x128xf32>
      %c6_i32_76 = arith.constant 6 : i32
      %194 = vector.broadcast %c6_i32_76 : i32 to vector<8x128xi32>
      %195 = arith.select %193, %194, %188 : vector<8x128xi1>, vector<8x128xi32>
      %196 = arith.maximumf %189, %192 : vector<8x128xf32>
      %197 = vector.extract_strided_slice %150 {offsets = [7, 0], sizes = [1, 128], strides = [1, 1]} : vector<8x128xf32> to vector<1x128xf32>
      %198 = vector.broadcast %197 : vector<1x128xf32> to vector<8x128xf32>
      %199 = arith.addf %26, %198 : vector<8x128xf32>
      %200 = arith.cmpf ogt, %199, %196 : vector<8x128xf32>
      %c7_i32_77 = arith.constant 7 : i32
      %201 = vector.broadcast %c7_i32_77 : i32 to vector<8x128xi32>
      %202 = arith.select %200, %201, %195 : vector<8x128xi1>, vector<8x128xi32>
      %203 = arith.maximumf %196, %199 : vector<8x128xf32>
      %204 = vector.shape_cast %65 : vector<1x128xi1> to vector<1x128xi1>
      %205 = vector.broadcast %204 : vector<1x128xi1> to vector<8x128xi1>
      %206 = arith.select %205, %202, %1 : vector<8x128xi1>, vector<8x128xi32>
      %207 = arith.index_cast %57 : i32 to index
      %c0_78 = arith.constant 0 : index
      %c0_79 = arith.constant 0 : index
      %208 = vector.load %arg8[%207, %c0_78, %c0_79] : memref<8x8x128xi32, #tpu.memory_space<vmem>>, vector<1x8x128xi32>
      %209 = vector.shape_cast %208 : vector<1x8x128xi32> to vector<8x128xi32>
      %210 = vector.shape_cast %206 : vector<8x128xi32> to vector<1x8x128xi32>
      tpu.vector_store %arg8[%207, %c0_78, %c0_79], %210 {strides = array<i32>} : memref<8x8x128xi32, #tpu.memory_space<vmem>>, vector<1x8x128xi32>,
      %211 = arith.addf %203, %61 : vector<8x128xf32>
      %212 = vector.shape_cast %65 : vector<1x128xi1> to vector<1x128xi1>
      %213 = vector.broadcast %212 : vector<1x128xi1> to vector<8x128xi1>
      %214 = arith.select %213, %211, %150 : vector<8x128xi1>, vector<8x128xf32>
      %c0_80 = arith.constant 0 : index
      %c0_81 = arith.constant 0 : index
      %215 = vector.load %arg9[%c0_80, %c0_81] : memref<8x128xf32, #tpu.memory_space<vmem>>, vector<8x128xf32>
      tpu.vector_store %arg9[%c0_80, %c0_81], %214 {strides = array<i32>} : memref<8x128xf32, #tpu.memory_space<vmem>>, vector<8x128xf32>,
    } else {
    }
    %c3_i32 = arith.constant 3 : i32
    %72 = arith.addi %0, %c3_i32 : i32
    %73 = arith.index_cast %c3_i32 : i32 to index
    %c0_25 = arith.constant 0 : index
    %c0_26 = arith.constant 0 : index
    %74 = vector.load %arg3[%73, %c0_25, %c0_26] : memref<8x8x128xbf16, #tpu.memory_space<vmem>>, vector<1x8x128xbf16>
    %75 = vector.shape_cast %74 : vector<1x8x128xbf16> to vector<8x128xbf16>
    %76 = arith.extf %75 : vector<8x128xbf16> to vector<8x128xf32>
    %77 = arith.index_cast %c3_i32 : i32 to index
    %c0_27 = arith.constant 0 : index
    %78 = vector.load %arg2[%77, %c0_27] : memref<8x128xi32, #tpu.memory_space<vmem>>, vector<1x128xi32>
    %c0_i32_28 = arith.constant 0 : i32
    %79 = vector.broadcast %c0_i32_28 : i32 to vector<1x128xi32>
    %80 = arith.cmpi ne, %78, %79 : vector<1x128xi32>
    %c0_i32_29 = arith.constant 0 : i32
    %81 = arith.cmpi eq, %72, %c0_i32_29 : i32
    %82 = arith.extui %81 : i1 to i32
    %c0_i32_30 = arith.constant 0 : i32
    %83 = arith.cmpi ne, %82, %c0_i32_30 : i32
    scf.if %83 {
      %150 = arith.addf %8, %76 : vector<8x128xf32>
      %c0_68 = arith.constant 0 : index
      %c0_69 = arith.constant 0 : index
      %151 = vector.load %arg9[%c0_68, %c0_69] : memref<8x128xf32, #tpu.memory_space<vmem>>, vector<8x128xf32>
      tpu.vector_store %arg9[%c0_68, %c0_69], %150 {strides = array<i32>} : memref<8x128xf32, #tpu.memory_space<vmem>>, vector<8x128xf32>,
    } else {
    }
    %c0_i32_31 = arith.constant 0 : i32
    %84 = arith.cmpi sgt, %72, %c0_i32_31 : i32
    %85 = arith.extui %84 : i1 to i32
    %c0_i32_32 = arith.constant 0 : i32
    %86 = arith.cmpi ne, %85, %c0_i32_32 : i32
    scf.if %86 {
      %c0_68 = arith.constant 0 : index
      %c0_69 = arith.constant 0 : index
      %150 = vector.load %arg9[%c0_68, %c0_69] : memref<8x128xf32, #tpu.memory_space<vmem>>, vector<8x128xf32>
      %151 = vector.extract_strided_slice %150 {offsets = [0, 0], sizes = [1, 128], strides = [1, 1]} : vector<8x128xf32> to vector<1x128xf32>
      %152 = vector.broadcast %151 : vector<1x128xf32> to vector<8x128xf32>
      %153 = arith.addf %5, %152 : vector<8x128xf32>
      %c0_i32_70 = arith.constant 0 : i32
      %154 = vector.broadcast %c0_i32_70 : i32 to vector<8x128xi32>
      %155 = vector.extract_strided_slice %150 {offsets = [1, 0], sizes = [1, 128], strides = [1, 1]} : vector<8x128xf32> to vector<1x128xf32>
      %156 = vector.broadcast %155 : vector<1x128xf32> to vector<8x128xf32>
      %157 = arith.addf %8, %156 : vector<8x128xf32>
      %158 = arith.cmpf ogt, %157, %153 : vector<8x128xf32>
      %c1_i32_71 = arith.constant 1 : i32
      %159 = vector.broadcast %c1_i32_71 : i32 to vector<8x128xi32>
      %160 = arith.select %158, %159, %154 : vector<8x128xi1>, vector<8x128xi32>
      %161 = arith.maximumf %153, %157 : vector<8x128xf32>
      %162 = vector.extract_strided_slice %150 {offsets = [2, 0], sizes = [1, 128], strides = [1, 1]} : vector<8x128xf32> to vector<1x128xf32>
      %163 = vector.broadcast %162 : vector<1x128xf32> to vector<8x128xf32>
      %164 = arith.addf %11, %163 : vector<8x128xf32>
      %165 = arith.cmpf ogt, %164, %161 : vector<8x128xf32>
      %c2_i32_72 = arith.constant 2 : i32
      %166 = vector.broadcast %c2_i32_72 : i32 to vector<8x128xi32>
      %167 = arith.select %165, %166, %160 : vector<8x128xi1>, vector<8x128xi32>
      %168 = arith.maximumf %161, %164 : vector<8x128xf32>
      %169 = vector.extract_strided_slice %150 {offsets = [3, 0], sizes = [1, 128], strides = [1, 1]} : vector<8x128xf32> to vector<1x128xf32>
      %170 = vector.broadcast %169 : vector<1x128xf32> to vector<8x128xf32>
      %171 = arith.addf %14, %170 : vector<8x128xf32>
      %172 = arith.cmpf ogt, %171, %168 : vector<8x128xf32>
      %c3_i32_73 = arith.constant 3 : i32
      %173 = vector.broadcast %c3_i32_73 : i32 to vector<8x128xi32>
      %174 = arith.select %172, %173, %167 : vector<8x128xi1>, vector<8x128xi32>
      %175 = arith.maximumf %168, %171 : vector<8x128xf32>
      %176 = vector.extract_strided_slice %150 {offsets = [4, 0], sizes = [1, 128], strides = [1, 1]} : vector<8x128xf32> to vector<1x128xf32>
      %177 = vector.broadcast %176 : vector<1x128xf32> to vector<8x128xf32>
      %178 = arith.addf %17, %177 : vector<8x128xf32>
      %179 = arith.cmpf ogt, %178, %175 : vector<8x128xf32>
      %c4_i32_74 = arith.constant 4 : i32
      %180 = vector.broadcast %c4_i32_74 : i32 to vector<8x128xi32>
      %181 = arith.select %179, %180, %174 : vector<8x128xi1>, vector<8x128xi32>
      %182 = arith.maximumf %175, %178 : vector<8x128xf32>
      %183 = vector.extract_strided_slice %150 {offsets = [5, 0], sizes = [1, 128], strides = [1, 1]} : vector<8x128xf32> to vector<1x128xf32>
      %184 = vector.broadcast %183 : vector<1x128xf32> to vector<8x128xf32>
      %185 = arith.addf %20, %184 : vector<8x128xf32>
      %186 = arith.cmpf ogt, %185, %182 : vector<8x128xf32>
      %c5_i32_75 = arith.constant 5 : i32
      %187 = vector.broadcast %c5_i32_75 : i32 to vector<8x128xi32>
      %188 = arith.select %186, %187, %181 : vector<8x128xi1>, vector<8x128xi32>
      %189 = arith.maximumf %182, %185 : vector<8x128xf32>
      %190 = vector.extract_strided_slice %150 {offsets = [6, 0], sizes = [1, 128], strides = [1, 1]} : vector<8x128xf32> to vector<1x128xf32>
      %191 = vector.broadcast %190 : vector<1x128xf32> to vector<8x128xf32>
      %192 = arith.addf %23, %191 : vector<8x128xf32>
      %193 = arith.cmpf ogt, %192, %189 : vector<8x128xf32>
      %c6_i32_76 = arith.constant 6 : i32
      %194 = vector.broadcast %c6_i32_76 : i32 to vector<8x128xi32>
      %195 = arith.select %193, %194, %188 : vector<8x128xi1>, vector<8x128xi32>
      %196 = arith.maximumf %189, %192 : vector<8x128xf32>
      %197 = vector.extract_strided_slice %150 {offsets = [7, 0], sizes = [1, 128], strides = [1, 1]} : vector<8x128xf32> to vector<1x128xf32>
      %198 = vector.broadcast %197 : vector<1x128xf32> to vector<8x128xf32>
      %199 = arith.addf %26, %198 : vector<8x128xf32>
      %200 = arith.cmpf ogt, %199, %196 : vector<8x128xf32>
      %c7_i32_77 = arith.constant 7 : i32
      %201 = vector.broadcast %c7_i32_77 : i32 to vector<8x128xi32>
      %202 = arith.select %200, %201, %195 : vector<8x128xi1>, vector<8x128xi32>
      %203 = arith.maximumf %196, %199 : vector<8x128xf32>
      %204 = vector.shape_cast %80 : vector<1x128xi1> to vector<1x128xi1>
      %205 = vector.broadcast %204 : vector<1x128xi1> to vector<8x128xi1>
      %206 = arith.select %205, %202, %1 : vector<8x128xi1>, vector<8x128xi32>
      %207 = arith.index_cast %72 : i32 to index
      %c0_78 = arith.constant 0 : index
      %c0_79 = arith.constant 0 : index
      %208 = vector.load %arg8[%207, %c0_78, %c0_79] : memref<8x8x128xi32, #tpu.memory_space<vmem>>, vector<1x8x128xi32>
      %209 = vector.shape_cast %208 : vector<1x8x128xi32> to vector<8x128xi32>
      %210 = vector.shape_cast %206 : vector<8x128xi32> to vector<1x8x128xi32>
      tpu.vector_store %arg8[%207, %c0_78, %c0_79], %210 {strides = array<i32>} : memref<8x8x128xi32, #tpu.memory_space<vmem>>, vector<1x8x128xi32>,
      %211 = arith.addf %203, %76 : vector<8x128xf32>
      %212 = vector.shape_cast %80 : vector<1x128xi1> to vector<1x128xi1>
      %213 = vector.broadcast %212 : vector<1x128xi1> to vector<8x128xi1>
      %214 = arith.select %213, %211, %150 : vector<8x128xi1>, vector<8x128xf32>
      %c0_80 = arith.constant 0 : index
      %c0_81 = arith.constant 0 : index
      %215 = vector.load %arg9[%c0_80, %c0_81] : memref<8x128xf32, #tpu.memory_space<vmem>>, vector<8x128xf32>
      tpu.vector_store %arg9[%c0_80, %c0_81], %214 {strides = array<i32>} : memref<8x128xf32, #tpu.memory_space<vmem>>, vector<8x128xf32>,
    } else {
    }
    %c4_i32 = arith.constant 4 : i32
    %87 = arith.addi %0, %c4_i32 : i32
    %88 = arith.index_cast %c4_i32 : i32 to index
    %c0_33 = arith.constant 0 : index
    %c0_34 = arith.constant 0 : index
    %89 = vector.load %arg3[%88, %c0_33, %c0_34] : memref<8x8x128xbf16, #tpu.memory_space<vmem>>, vector<1x8x128xbf16>
    %90 = vector.shape_cast %89 : vector<1x8x128xbf16> to vector<8x128xbf16>
    %91 = arith.extf %90 : vector<8x128xbf16> to vector<8x128xf32>
    %92 = arith.index_cast %c4_i32 : i32 to index
    %c0_35 = arith.constant 0 : index
    %93 = vector.load %arg2[%92, %c0_35] : memref<8x128xi32, #tpu.memory_space<vmem>>, vector<1x128xi32>
    %c0_i32_36 = arith.constant 0 : i32
    %94 = vector.broadcast %c0_i32_36 : i32 to vector<1x128xi32>
    %95 = arith.cmpi ne, %93, %94 : vector<1x128xi32>
    %c0_i32_37 = arith.constant 0 : i32
    %96 = arith.cmpi eq, %87, %c0_i32_37 : i32
    %97 = arith.extui %96 : i1 to i32
    %c0_i32_38 = arith.constant 0 : i32
    %98 = arith.cmpi ne, %97, %c0_i32_38 : i32
    scf.if %98 {
      %150 = arith.addf %8, %91 : vector<8x128xf32>
      %c0_68 = arith.constant 0 : index
      %c0_69 = arith.constant 0 : index
      %151 = vector.load %arg9[%c0_68, %c0_69] : memref<8x128xf32, #tpu.memory_space<vmem>>, vector<8x128xf32>
      tpu.vector_store %arg9[%c0_68, %c0_69], %150 {strides = array<i32>} : memref<8x128xf32, #tpu.memory_space<vmem>>, vector<8x128xf32>,
    } else {
    }
    %c0_i32_39 = arith.constant 0 : i32
    %99 = arith.cmpi sgt, %87, %c0_i32_39 : i32
    %100 = arith.extui %99 : i1 to i32
    %c0_i32_40 = arith.constant 0 : i32
    %101 = arith.cmpi ne, %100, %c0_i32_40 : i32
    scf.if %101 {
      %c0_68 = arith.constant 0 : index
      %c0_69 = arith.constant 0 : index
      %150 = vector.load %arg9[%c0_68, %c0_69] : memref<8x128xf32, #tpu.memory_space<vmem>>, vector<8x128xf32>
      %151 = vector.extract_strided_slice %150 {offsets = [0, 0], sizes = [1, 128], strides = [1, 1]} : vector<8x128xf32> to vector<1x128xf32>
      %152 = vector.broadcast %151 : vector<1x128xf32> to vector<8x128xf32>
      %153 = arith.addf %5, %152 : vector<8x128xf32>
      %c0_i32_70 = arith.constant 0 : i32
      %154 = vector.broadcast %c0_i32_70 : i32 to vector<8x128xi32>
      %155 = vector.extract_strided_slice %150 {offsets = [1, 0], sizes = [1, 128], strides = [1, 1]} : vector<8x128xf32> to vector<1x128xf32>
      %156 = vector.broadcast %155 : vector<1x128xf32> to vector<8x128xf32>
      %157 = arith.addf %8, %156 : vector<8x128xf32>
      %158 = arith.cmpf ogt, %157, %153 : vector<8x128xf32>
      %c1_i32_71 = arith.constant 1 : i32
      %159 = vector.broadcast %c1_i32_71 : i32 to vector<8x128xi32>
      %160 = arith.select %158, %159, %154 : vector<8x128xi1>, vector<8x128xi32>
      %161 = arith.maximumf %153, %157 : vector<8x128xf32>
      %162 = vector.extract_strided_slice %150 {offsets = [2, 0], sizes = [1, 128], strides = [1, 1]} : vector<8x128xf32> to vector<1x128xf32>
      %163 = vector.broadcast %162 : vector<1x128xf32> to vector<8x128xf32>
      %164 = arith.addf %11, %163 : vector<8x128xf32>
      %165 = arith.cmpf ogt, %164, %161 : vector<8x128xf32>
      %c2_i32_72 = arith.constant 2 : i32
      %166 = vector.broadcast %c2_i32_72 : i32 to vector<8x128xi32>
      %167 = arith.select %165, %166, %160 : vector<8x128xi1>, vector<8x128xi32>
      %168 = arith.maximumf %161, %164 : vector<8x128xf32>
      %169 = vector.extract_strided_slice %150 {offsets = [3, 0], sizes = [1, 128], strides = [1, 1]} : vector<8x128xf32> to vector<1x128xf32>
      %170 = vector.broadcast %169 : vector<1x128xf32> to vector<8x128xf32>
      %171 = arith.addf %14, %170 : vector<8x128xf32>
      %172 = arith.cmpf ogt, %171, %168 : vector<8x128xf32>
      %c3_i32_73 = arith.constant 3 : i32
      %173 = vector.broadcast %c3_i32_73 : i32 to vector<8x128xi32>
      %174 = arith.select %172, %173, %167 : vector<8x128xi1>, vector<8x128xi32>
      %175 = arith.maximumf %168, %171 : vector<8x128xf32>
      %176 = vector.extract_strided_slice %150 {offsets = [4, 0], sizes = [1, 128], strides = [1, 1]} : vector<8x128xf32> to vector<1x128xf32>
      %177 = vector.broadcast %176 : vector<1x128xf32> to vector<8x128xf32>
      %178 = arith.addf %17, %177 : vector<8x128xf32>
      %179 = arith.cmpf ogt, %178, %175 : vector<8x128xf32>
      %c4_i32_74 = arith.constant 4 : i32
      %180 = vector.broadcast %c4_i32_74 : i32 to vector<8x128xi32>
      %181 = arith.select %179, %180, %174 : vector<8x128xi1>, vector<8x128xi32>
      %182 = arith.maximumf %175, %178 : vector<8x128xf32>
      %183 = vector.extract_strided_slice %150 {offsets = [5, 0], sizes = [1, 128], strides = [1, 1]} : vector<8x128xf32> to vector<1x128xf32>
      %184 = vector.broadcast %183 : vector<1x128xf32> to vector<8x128xf32>
      %185 = arith.addf %20, %184 : vector<8x128xf32>
      %186 = arith.cmpf ogt, %185, %182 : vector<8x128xf32>
      %c5_i32_75 = arith.constant 5 : i32
      %187 = vector.broadcast %c5_i32_75 : i32 to vector<8x128xi32>
      %188 = arith.select %186, %187, %181 : vector<8x128xi1>, vector<8x128xi32>
      %189 = arith.maximumf %182, %185 : vector<8x128xf32>
      %190 = vector.extract_strided_slice %150 {offsets = [6, 0], sizes = [1, 128], strides = [1, 1]} : vector<8x128xf32> to vector<1x128xf32>
      %191 = vector.broadcast %190 : vector<1x128xf32> to vector<8x128xf32>
      %192 = arith.addf %23, %191 : vector<8x128xf32>
      %193 = arith.cmpf ogt, %192, %189 : vector<8x128xf32>
      %c6_i32_76 = arith.constant 6 : i32
      %194 = vector.broadcast %c6_i32_76 : i32 to vector<8x128xi32>
      %195 = arith.select %193, %194, %188 : vector<8x128xi1>, vector<8x128xi32>
      %196 = arith.maximumf %189, %192 : vector<8x128xf32>
      %197 = vector.extract_strided_slice %150 {offsets = [7, 0], sizes = [1, 128], strides = [1, 1]} : vector<8x128xf32> to vector<1x128xf32>
      %198 = vector.broadcast %197 : vector<1x128xf32> to vector<8x128xf32>
      %199 = arith.addf %26, %198 : vector<8x128xf32>
      %200 = arith.cmpf ogt, %199, %196 : vector<8x128xf32>
      %c7_i32_77 = arith.constant 7 : i32
      %201 = vector.broadcast %c7_i32_77 : i32 to vector<8x128xi32>
      %202 = arith.select %200, %201, %195 : vector<8x128xi1>, vector<8x128xi32>
      %203 = arith.maximumf %196, %199 : vector<8x128xf32>
      %204 = vector.shape_cast %95 : vector<1x128xi1> to vector<1x128xi1>
      %205 = vector.broadcast %204 : vector<1x128xi1> to vector<8x128xi1>
      %206 = arith.select %205, %202, %1 : vector<8x128xi1>, vector<8x128xi32>
      %207 = arith.index_cast %87 : i32 to index
      %c0_78 = arith.constant 0 : index
      %c0_79 = arith.constant 0 : index
      %208 = vector.load %arg8[%207, %c0_78, %c0_79] : memref<8x8x128xi32, #tpu.memory_space<vmem>>, vector<1x8x128xi32>
      %209 = vector.shape_cast %208 : vector<1x8x128xi32> to vector<8x128xi32>
      %210 = vector.shape_cast %206 : vector<8x128xi32> to vector<1x8x128xi32>
      tpu.vector_store %arg8[%207, %c0_78, %c0_79], %210 {strides = array<i32>} : memref<8x8x128xi32, #tpu.memory_space<vmem>>, vector<1x8x128xi32>,
      %211 = arith.addf %203, %91 : vector<8x128xf32>
      %212 = vector.shape_cast %95 : vector<1x128xi1> to vector<1x128xi1>
      %213 = vector.broadcast %212 : vector<1x128xi1> to vector<8x128xi1>
      %214 = arith.select %213, %211, %150 : vector<8x128xi1>, vector<8x128xf32>
      %c0_80 = arith.constant 0 : index
      %c0_81 = arith.constant 0 : index
      %215 = vector.load %arg9[%c0_80, %c0_81] : memref<8x128xf32, #tpu.memory_space<vmem>>, vector<8x128xf32>
      tpu.vector_store %arg9[%c0_80, %c0_81], %214 {strides = array<i32>} : memref<8x128xf32, #tpu.memory_space<vmem>>, vector<8x128xf32>,
    } else {
    }
    %c5_i32 = arith.constant 5 : i32
    %102 = arith.addi %0, %c5_i32 : i32
    %103 = arith.index_cast %c5_i32 : i32 to index
    %c0_41 = arith.constant 0 : index
    %c0_42 = arith.constant 0 : index
    %104 = vector.load %arg3[%103, %c0_41, %c0_42] : memref<8x8x128xbf16, #tpu.memory_space<vmem>>, vector<1x8x128xbf16>
    %105 = vector.shape_cast %104 : vector<1x8x128xbf16> to vector<8x128xbf16>
    %106 = arith.extf %105 : vector<8x128xbf16> to vector<8x128xf32>
    %107 = arith.index_cast %c5_i32 : i32 to index
    %c0_43 = arith.constant 0 : index
    %108 = vector.load %arg2[%107, %c0_43] : memref<8x128xi32, #tpu.memory_space<vmem>>, vector<1x128xi32>
    %c0_i32_44 = arith.constant 0 : i32
    %109 = vector.broadcast %c0_i32_44 : i32 to vector<1x128xi32>
    %110 = arith.cmpi ne, %108, %109 : vector<1x128xi32>
    %c0_i32_45 = arith.constant 0 : i32
    %111 = arith.cmpi eq, %102, %c0_i32_45 : i32
    %112 = arith.extui %111 : i1 to i32
    %c0_i32_46 = arith.constant 0 : i32
    %113 = arith.cmpi ne, %112, %c0_i32_46 : i32
    scf.if %113 {
      %150 = arith.addf %8, %106 : vector<8x128xf32>
      %c0_68 = arith.constant 0 : index
      %c0_69 = arith.constant 0 : index
      %151 = vector.load %arg9[%c0_68, %c0_69] : memref<8x128xf32, #tpu.memory_space<vmem>>, vector<8x128xf32>
      tpu.vector_store %arg9[%c0_68, %c0_69], %150 {strides = array<i32>} : memref<8x128xf32, #tpu.memory_space<vmem>>, vector<8x128xf32>,
    } else {
    }
    %c0_i32_47 = arith.constant 0 : i32
    %114 = arith.cmpi sgt, %102, %c0_i32_47 : i32
    %115 = arith.extui %114 : i1 to i32
    %c0_i32_48 = arith.constant 0 : i32
    %116 = arith.cmpi ne, %115, %c0_i32_48 : i32
    scf.if %116 {
      %c0_68 = arith.constant 0 : index
      %c0_69 = arith.constant 0 : index
      %150 = vector.load %arg9[%c0_68, %c0_69] : memref<8x128xf32, #tpu.memory_space<vmem>>, vector<8x128xf32>
      %151 = vector.extract_strided_slice %150 {offsets = [0, 0], sizes = [1, 128], strides = [1, 1]} : vector<8x128xf32> to vector<1x128xf32>
      %152 = vector.broadcast %151 : vector<1x128xf32> to vector<8x128xf32>
      %153 = arith.addf %5, %152 : vector<8x128xf32>
      %c0_i32_70 = arith.constant 0 : i32
      %154 = vector.broadcast %c0_i32_70 : i32 to vector<8x128xi32>
      %155 = vector.extract_strided_slice %150 {offsets = [1, 0], sizes = [1, 128], strides = [1, 1]} : vector<8x128xf32> to vector<1x128xf32>
      %156 = vector.broadcast %155 : vector<1x128xf32> to vector<8x128xf32>
      %157 = arith.addf %8, %156 : vector<8x128xf32>
      %158 = arith.cmpf ogt, %157, %153 : vector<8x128xf32>
      %c1_i32_71 = arith.constant 1 : i32
      %159 = vector.broadcast %c1_i32_71 : i32 to vector<8x128xi32>
      %160 = arith.select %158, %159, %154 : vector<8x128xi1>, vector<8x128xi32>
      %161 = arith.maximumf %153, %157 : vector<8x128xf32>
      %162 = vector.extract_strided_slice %150 {offsets = [2, 0], sizes = [1, 128], strides = [1, 1]} : vector<8x128xf32> to vector<1x128xf32>
      %163 = vector.broadcast %162 : vector<1x128xf32> to vector<8x128xf32>
      %164 = arith.addf %11, %163 : vector<8x128xf32>
      %165 = arith.cmpf ogt, %164, %161 : vector<8x128xf32>
      %c2_i32_72 = arith.constant 2 : i32
      %166 = vector.broadcast %c2_i32_72 : i32 to vector<8x128xi32>
      %167 = arith.select %165, %166, %160 : vector<8x128xi1>, vector<8x128xi32>
      %168 = arith.maximumf %161, %164 : vector<8x128xf32>
      %169 = vector.extract_strided_slice %150 {offsets = [3, 0], sizes = [1, 128], strides = [1, 1]} : vector<8x128xf32> to vector<1x128xf32>
      %170 = vector.broadcast %169 : vector<1x128xf32> to vector<8x128xf32>
      %171 = arith.addf %14, %170 : vector<8x128xf32>
      %172 = arith.cmpf ogt, %171, %168 : vector<8x128xf32>
      %c3_i32_73 = arith.constant 3 : i32
      %173 = vector.broadcast %c3_i32_73 : i32 to vector<8x128xi32>
      %174 = arith.select %172, %173, %167 : vector<8x128xi1>, vector<8x128xi32>
      %175 = arith.maximumf %168, %171 : vector<8x128xf32>
      %176 = vector.extract_strided_slice %150 {offsets = [4, 0], sizes = [1, 128], strides = [1, 1]} : vector<8x128xf32> to vector<1x128xf32>
      %177 = vector.broadcast %176 : vector<1x128xf32> to vector<8x128xf32>
      %178 = arith.addf %17, %177 : vector<8x128xf32>
      %179 = arith.cmpf ogt, %178, %175 : vector<8x128xf32>
      %c4_i32_74 = arith.constant 4 : i32
      %180 = vector.broadcast %c4_i32_74 : i32 to vector<8x128xi32>
      %181 = arith.select %179, %180, %174 : vector<8x128xi1>, vector<8x128xi32>
      %182 = arith.maximumf %175, %178 : vector<8x128xf32>
      %183 = vector.extract_strided_slice %150 {offsets = [5, 0], sizes = [1, 128], strides = [1, 1]} : vector<8x128xf32> to vector<1x128xf32>
      %184 = vector.broadcast %183 : vector<1x128xf32> to vector<8x128xf32>
      %185 = arith.addf %20, %184 : vector<8x128xf32>
      %186 = arith.cmpf ogt, %185, %182 : vector<8x128xf32>
      %c5_i32_75 = arith.constant 5 : i32
      %187 = vector.broadcast %c5_i32_75 : i32 to vector<8x128xi32>
      %188 = arith.select %186, %187, %181 : vector<8x128xi1>, vector<8x128xi32>
      %189 = arith.maximumf %182, %185 : vector<8x128xf32>
      %190 = vector.extract_strided_slice %150 {offsets = [6, 0], sizes = [1, 128], strides = [1, 1]} : vector<8x128xf32> to vector<1x128xf32>
      %191 = vector.broadcast %190 : vector<1x128xf32> to vector<8x128xf32>
      %192 = arith.addf %23, %191 : vector<8x128xf32>
      %193 = arith.cmpf ogt, %192, %189 : vector<8x128xf32>
      %c6_i32_76 = arith.constant 6 : i32
      %194 = vector.broadcast %c6_i32_76 : i32 to vector<8x128xi32>
      %195 = arith.select %193, %194, %188 : vector<8x128xi1>, vector<8x128xi32>
      %196 = arith.maximumf %189, %192 : vector<8x128xf32>
      %197 = vector.extract_strided_slice %150 {offsets = [7, 0], sizes = [1, 128], strides = [1, 1]} : vector<8x128xf32> to vector<1x128xf32>
      %198 = vector.broadcast %197 : vector<1x128xf32> to vector<8x128xf32>
      %199 = arith.addf %26, %198 : vector<8x128xf32>
      %200 = arith.cmpf ogt, %199, %196 : vector<8x128xf32>
      %c7_i32_77 = arith.constant 7 : i32
      %201 = vector.broadcast %c7_i32_77 : i32 to vector<8x128xi32>
      %202 = arith.select %200, %201, %195 : vector<8x128xi1>, vector<8x128xi32>
      %203 = arith.maximumf %196, %199 : vector<8x128xf32>
      %204 = vector.shape_cast %110 : vector<1x128xi1> to vector<1x128xi1>
      %205 = vector.broadcast %204 : vector<1x128xi1> to vector<8x128xi1>
      %206 = arith.select %205, %202, %1 : vector<8x128xi1>, vector<8x128xi32>
      %207 = arith.index_cast %102 : i32 to index
      %c0_78 = arith.constant 0 : index
      %c0_79 = arith.constant 0 : index
      %208 = vector.load %arg8[%207, %c0_78, %c0_79] : memref<8x8x128xi32, #tpu.memory_space<vmem>>, vector<1x8x128xi32>
      %209 = vector.shape_cast %208 : vector<1x8x128xi32> to vector<8x128xi32>
      %210 = vector.shape_cast %206 : vector<8x128xi32> to vector<1x8x128xi32>
      tpu.vector_store %arg8[%207, %c0_78, %c0_79], %210 {strides = array<i32>} : memref<8x8x128xi32, #tpu.memory_space<vmem>>, vector<1x8x128xi32>,
      %211 = arith.addf %203, %106 : vector<8x128xf32>
      %212 = vector.shape_cast %110 : vector<1x128xi1> to vector<1x128xi1>
      %213 = vector.broadcast %212 : vector<1x128xi1> to vector<8x128xi1>
      %214 = arith.select %213, %211, %150 : vector<8x128xi1>, vector<8x128xf32>
      %c0_80 = arith.constant 0 : index
      %c0_81 = arith.constant 0 : index
      %215 = vector.load %arg9[%c0_80, %c0_81] : memref<8x128xf32, #tpu.memory_space<vmem>>, vector<8x128xf32>
      tpu.vector_store %arg9[%c0_80, %c0_81], %214 {strides = array<i32>} : memref<8x128xf32, #tpu.memory_space<vmem>>, vector<8x128xf32>,
    } else {
    }
    %c6_i32 = arith.constant 6 : i32
    %117 = arith.addi %0, %c6_i32 : i32
    %118 = arith.index_cast %c6_i32 : i32 to index
    %c0_49 = arith.constant 0 : index
    %c0_50 = arith.constant 0 : index
    %119 = vector.load %arg3[%118, %c0_49, %c0_50] : memref<8x8x128xbf16, #tpu.memory_space<vmem>>, vector<1x8x128xbf16>
    %120 = vector.shape_cast %119 : vector<1x8x128xbf16> to vector<8x128xbf16>
    %121 = arith.extf %120 : vector<8x128xbf16> to vector<8x128xf32>
    %122 = arith.index_cast %c6_i32 : i32 to index
    %c0_51 = arith.constant 0 : index
    %123 = vector.load %arg2[%122, %c0_51] : memref<8x128xi32, #tpu.memory_space<vmem>>, vector<1x128xi32>
    %c0_i32_52 = arith.constant 0 : i32
    %124 = vector.broadcast %c0_i32_52 : i32 to vector<1x128xi32>
    %125 = arith.cmpi ne, %123, %124 : vector<1x128xi32>
    %c0_i32_53 = arith.constant 0 : i32
    %126 = arith.cmpi eq, %117, %c0_i32_53 : i32
    %127 = arith.extui %126 : i1 to i32
    %c0_i32_54 = arith.constant 0 : i32
    %128 = arith.cmpi ne, %127, %c0_i32_54 : i32
    scf.if %128 {
      %150 = arith.addf %8, %121 : vector<8x128xf32>
      %c0_68 = arith.constant 0 : index
      %c0_69 = arith.constant 0 : index
      %151 = vector.load %arg9[%c0_68, %c0_69] : memref<8x128xf32, #tpu.memory_space<vmem>>, vector<8x128xf32>
      tpu.vector_store %arg9[%c0_68, %c0_69], %150 {strides = array<i32>} : memref<8x128xf32, #tpu.memory_space<vmem>>, vector<8x128xf32>,
    } else {
    }
    %c0_i32_55 = arith.constant 0 : i32
    %129 = arith.cmpi sgt, %117, %c0_i32_55 : i32
    %130 = arith.extui %129 : i1 to i32
    %c0_i32_56 = arith.constant 0 : i32
    %131 = arith.cmpi ne, %130, %c0_i32_56 : i32
    scf.if %131 {
      %c0_68 = arith.constant 0 : index
      %c0_69 = arith.constant 0 : index
      %150 = vector.load %arg9[%c0_68, %c0_69] : memref<8x128xf32, #tpu.memory_space<vmem>>, vector<8x128xf32>
      %151 = vector.extract_strided_slice %150 {offsets = [0, 0], sizes = [1, 128], strides = [1, 1]} : vector<8x128xf32> to vector<1x128xf32>
      %152 = vector.broadcast %151 : vector<1x128xf32> to vector<8x128xf32>
      %153 = arith.addf %5, %152 : vector<8x128xf32>
      %c0_i32_70 = arith.constant 0 : i32
      %154 = vector.broadcast %c0_i32_70 : i32 to vector<8x128xi32>
      %155 = vector.extract_strided_slice %150 {offsets = [1, 0], sizes = [1, 128], strides = [1, 1]} : vector<8x128xf32> to vector<1x128xf32>
      %156 = vector.broadcast %155 : vector<1x128xf32> to vector<8x128xf32>
      %157 = arith.addf %8, %156 : vector<8x128xf32>
      %158 = arith.cmpf ogt, %157, %153 : vector<8x128xf32>
      %c1_i32_71 = arith.constant 1 : i32
      %159 = vector.broadcast %c1_i32_71 : i32 to vector<8x128xi32>
      %160 = arith.select %158, %159, %154 : vector<8x128xi1>, vector<8x128xi32>
      %161 = arith.maximumf %153, %157 : vector<8x128xf32>
      %162 = vector.extract_strided_slice %150 {offsets = [2, 0], sizes = [1, 128], strides = [1, 1]} : vector<8x128xf32> to vector<1x128xf32>
      %163 = vector.broadcast %162 : vector<1x128xf32> to vector<8x128xf32>
      %164 = arith.addf %11, %163 : vector<8x128xf32>
      %165 = arith.cmpf ogt, %164, %161 : vector<8x128xf32>
      %c2_i32_72 = arith.constant 2 : i32
      %166 = vector.broadcast %c2_i32_72 : i32 to vector<8x128xi32>
      %167 = arith.select %165, %166, %160 : vector<8x128xi1>, vector<8x128xi32>
      %168 = arith.maximumf %161, %164 : vector<8x128xf32>
      %169 = vector.extract_strided_slice %150 {offsets = [3, 0], sizes = [1, 128], strides = [1, 1]} : vector<8x128xf32> to vector<1x128xf32>
      %170 = vector.broadcast %169 : vector<1x128xf32> to vector<8x128xf32>
      %171 = arith.addf %14, %170 : vector<8x128xf32>
      %172 = arith.cmpf ogt, %171, %168 : vector<8x128xf32>
      %c3_i32_73 = arith.constant 3 : i32
      %173 = vector.broadcast %c3_i32_73 : i32 to vector<8x128xi32>
      %174 = arith.select %172, %173, %167 : vector<8x128xi1>, vector<8x128xi32>
      %175 = arith.maximumf %168, %171 : vector<8x128xf32>
      %176 = vector.extract_strided_slice %150 {offsets = [4, 0], sizes = [1, 128], strides = [1, 1]} : vector<8x128xf32> to vector<1x128xf32>
      %177 = vector.broadcast %176 : vector<1x128xf32> to vector<8x128xf32>
      %178 = arith.addf %17, %177 : vector<8x128xf32>
      %179 = arith.cmpf ogt, %178, %175 : vector<8x128xf32>
      %c4_i32_74 = arith.constant 4 : i32
      %180 = vector.broadcast %c4_i32_74 : i32 to vector<8x128xi32>
      %181 = arith.select %179, %180, %174 : vector<8x128xi1>, vector<8x128xi32>
      %182 = arith.maximumf %175, %178 : vector<8x128xf32>
      %183 = vector.extract_strided_slice %150 {offsets = [5, 0], sizes = [1, 128], strides = [1, 1]} : vector<8x128xf32> to vector<1x128xf32>
      %184 = vector.broadcast %183 : vector<1x128xf32> to vector<8x128xf32>
      %185 = arith.addf %20, %184 : vector<8x128xf32>
      %186 = arith.cmpf ogt, %185, %182 : vector<8x128xf32>
      %c5_i32_75 = arith.constant 5 : i32
      %187 = vector.broadcast %c5_i32_75 : i32 to vector<8x128xi32>
      %188 = arith.select %186, %187, %181 : vector<8x128xi1>, vector<8x128xi32>
      %189 = arith.maximumf %182, %185 : vector<8x128xf32>
      %190 = vector.extract_strided_slice %150 {offsets = [6, 0], sizes = [1, 128], strides = [1, 1]} : vector<8x128xf32> to vector<1x128xf32>
      %191 = vector.broadcast %190 : vector<1x128xf32> to vector<8x128xf32>
      %192 = arith.addf %23, %191 : vector<8x128xf32>
      %193 = arith.cmpf ogt, %192, %189 : vector<8x128xf32>
      %c6_i32_76 = arith.constant 6 : i32
      %194 = vector.broadcast %c6_i32_76 : i32 to vector<8x128xi32>
      %195 = arith.select %193, %194, %188 : vector<8x128xi1>, vector<8x128xi32>
      %196 = arith.maximumf %189, %192 : vector<8x128xf32>
      %197 = vector.extract_strided_slice %150 {offsets = [7, 0], sizes = [1, 128], strides = [1, 1]} : vector<8x128xf32> to vector<1x128xf32>
      %198 = vector.broadcast %197 : vector<1x128xf32> to vector<8x128xf32>
      %199 = arith.addf %26, %198 : vector<8x128xf32>
      %200 = arith.cmpf ogt, %199, %196 : vector<8x128xf32>
      %c7_i32_77 = arith.constant 7 : i32
      %201 = vector.broadcast %c7_i32_77 : i32 to vector<8x128xi32>
      %202 = arith.select %200, %201, %195 : vector<8x128xi1>, vector<8x128xi32>
      %203 = arith.maximumf %196, %199 : vector<8x128xf32>
      %204 = vector.shape_cast %125 : vector<1x128xi1> to vector<1x128xi1>
      %205 = vector.broadcast %204 : vector<1x128xi1> to vector<8x128xi1>
      %206 = arith.select %205, %202, %1 : vector<8x128xi1>, vector<8x128xi32>
      %207 = arith.index_cast %117 : i32 to index
      %c0_78 = arith.constant 0 : index
      %c0_79 = arith.constant 0 : index
      %208 = vector.load %arg8[%207, %c0_78, %c0_79] : memref<8x8x128xi32, #tpu.memory_space<vmem>>, vector<1x8x128xi32>
      %209 = vector.shape_cast %208 : vector<1x8x128xi32> to vector<8x128xi32>
      %210 = vector.shape_cast %206 : vector<8x128xi32> to vector<1x8x128xi32>
      tpu.vector_store %arg8[%207, %c0_78, %c0_79], %210 {strides = array<i32>} : memref<8x8x128xi32, #tpu.memory_space<vmem>>, vector<1x8x128xi32>,
      %211 = arith.addf %203, %121 : vector<8x128xf32>
      %212 = vector.shape_cast %125 : vector<1x128xi1> to vector<1x128xi1>
      %213 = vector.broadcast %212 : vector<1x128xi1> to vector<8x128xi1>
      %214 = arith.select %213, %211, %150 : vector<8x128xi1>, vector<8x128xf32>
      %c0_80 = arith.constant 0 : index
      %c0_81 = arith.constant 0 : index
      %215 = vector.load %arg9[%c0_80, %c0_81] : memref<8x128xf32, #tpu.memory_space<vmem>>, vector<8x128xf32>
      tpu.vector_store %arg9[%c0_80, %c0_81], %214 {strides = array<i32>} : memref<8x128xf32, #tpu.memory_space<vmem>>, vector<8x128xf32>,
    } else {
    }
    %c7_i32 = arith.constant 7 : i32
    %132 = arith.addi %0, %c7_i32 : i32
    %133 = arith.index_cast %c7_i32 : i32 to index
    %c0_57 = arith.constant 0 : index
    %c0_58 = arith.constant 0 : index
    %134 = vector.load %arg3[%133, %c0_57, %c0_58] : memref<8x8x128xbf16, #tpu.memory_space<vmem>>, vector<1x8x128xbf16>
    %135 = vector.shape_cast %134 : vector<1x8x128xbf16> to vector<8x128xbf16>
    %136 = arith.extf %135 : vector<8x128xbf16> to vector<8x128xf32>
    %137 = arith.index_cast %c7_i32 : i32 to index
    %c0_59 = arith.constant 0 : index
    %138 = vector.load %arg2[%137, %c0_59] : memref<8x128xi32, #tpu.memory_space<vmem>>, vector<1x128xi32>
    %c0_i32_60 = arith.constant 0 : i32
    %139 = vector.broadcast %c0_i32_60 : i32 to vector<1x128xi32>
    %140 = arith.cmpi ne, %138, %139 : vector<1x128xi32>
    %c0_i32_61 = arith.constant 0 : i32
    %141 = arith.cmpi eq, %132, %c0_i32_61 : i32
    %142 = arith.extui %141 : i1 to i32
    %c0_i32_62 = arith.constant 0 : i32
    %143 = arith.cmpi ne, %142, %c0_i32_62 : i32
    scf.if %143 {
      %150 = arith.addf %8, %136 : vector<8x128xf32>
      %c0_68 = arith.constant 0 : index
      %c0_69 = arith.constant 0 : index
      %151 = vector.load %arg9[%c0_68, %c0_69] : memref<8x128xf32, #tpu.memory_space<vmem>>, vector<8x128xf32>
      tpu.vector_store %arg9[%c0_68, %c0_69], %150 {strides = array<i32>} : memref<8x128xf32, #tpu.memory_space<vmem>>, vector<8x128xf32>,
    } else {
    }
    %c0_i32_63 = arith.constant 0 : i32
    %144 = arith.cmpi sgt, %132, %c0_i32_63 : i32
    %145 = arith.extui %144 : i1 to i32
    %c0_i32_64 = arith.constant 0 : i32
    %146 = arith.cmpi ne, %145, %c0_i32_64 : i32
    scf.if %146 {
      %c0_68 = arith.constant 0 : index
      %c0_69 = arith.constant 0 : index
      %150 = vector.load %arg9[%c0_68, %c0_69] : memref<8x128xf32, #tpu.memory_space<vmem>>, vector<8x128xf32>
      %151 = vector.extract_strided_slice %150 {offsets = [0, 0], sizes = [1, 128], strides = [1, 1]} : vector<8x128xf32> to vector<1x128xf32>
      %152 = vector.broadcast %151 : vector<1x128xf32> to vector<8x128xf32>
      %153 = arith.addf %5, %152 : vector<8x128xf32>
      %c0_i32_70 = arith.constant 0 : i32
      %154 = vector.broadcast %c0_i32_70 : i32 to vector<8x128xi32>
      %155 = vector.extract_strided_slice %150 {offsets = [1, 0], sizes = [1, 128], strides = [1, 1]} : vector<8x128xf32> to vector<1x128xf32>
      %156 = vector.broadcast %155 : vector<1x128xf32> to vector<8x128xf32>
      %157 = arith.addf %8, %156 : vector<8x128xf32>
      %158 = arith.cmpf ogt, %157, %153 : vector<8x128xf32>
      %c1_i32_71 = arith.constant 1 : i32
      %159 = vector.broadcast %c1_i32_71 : i32 to vector<8x128xi32>
      %160 = arith.select %158, %159, %154 : vector<8x128xi1>, vector<8x128xi32>
      %161 = arith.maximumf %153, %157 : vector<8x128xf32>
      %162 = vector.extract_strided_slice %150 {offsets = [2, 0], sizes = [1, 128], strides = [1, 1]} : vector<8x128xf32> to vector<1x128xf32>
      %163 = vector.broadcast %162 : vector<1x128xf32> to vector<8x128xf32>
      %164 = arith.addf %11, %163 : vector<8x128xf32>
      %165 = arith.cmpf ogt, %164, %161 : vector<8x128xf32>
      %c2_i32_72 = arith.constant 2 : i32
      %166 = vector.broadcast %c2_i32_72 : i32 to vector<8x128xi32>
      %167 = arith.select %165, %166, %160 : vector<8x128xi1>, vector<8x128xi32>
      %168 = arith.maximumf %161, %164 : vector<8x128xf32>
      %169 = vector.extract_strided_slice %150 {offsets = [3, 0], sizes = [1, 128], strides = [1, 1]} : vector<8x128xf32> to vector<1x128xf32>
      %170 = vector.broadcast %169 : vector<1x128xf32> to vector<8x128xf32>
      %171 = arith.addf %14, %170 : vector<8x128xf32>
      %172 = arith.cmpf ogt, %171, %168 : vector<8x128xf32>
      %c3_i32_73 = arith.constant 3 : i32
      %173 = vector.broadcast %c3_i32_73 : i32 to vector<8x128xi32>
      %174 = arith.select %172, %173, %167 : vector<8x128xi1>, vector<8x128xi32>
      %175 = arith.maximumf %168, %171 : vector<8x128xf32>
      %176 = vector.extract_strided_slice %150 {offsets = [4, 0], sizes = [1, 128], strides = [1, 1]} : vector<8x128xf32> to vector<1x128xf32>
      %177 = vector.broadcast %176 : vector<1x128xf32> to vector<8x128xf32>
      %178 = arith.addf %17, %177 : vector<8x128xf32>
      %179 = arith.cmpf ogt, %178, %175 : vector<8x128xf32>
      %c4_i32_74 = arith.constant 4 : i32
      %180 = vector.broadcast %c4_i32_74 : i32 to vector<8x128xi32>
      %181 = arith.select %179, %180, %174 : vector<8x128xi1>, vector<8x128xi32>
      %182 = arith.maximumf %175, %178 : vector<8x128xf32>
      %183 = vector.extract_strided_slice %150 {offsets = [5, 0], sizes = [1, 128], strides = [1, 1]} : vector<8x128xf32> to vector<1x128xf32>
      %184 = vector.broadcast %183 : vector<1x128xf32> to vector<8x128xf32>
      %185 = arith.addf %20, %184 : vector<8x128xf32>
      %186 = arith.cmpf ogt, %185, %182 : vector<8x128xf32>
      %c5_i32_75 = arith.constant 5 : i32
      %187 = vector.broadcast %c5_i32_75 : i32 to vector<8x128xi32>
      %188 = arith.select %186, %187, %181 : vector<8x128xi1>, vector<8x128xi32>
      %189 = arith.maximumf %182, %185 : vector<8x128xf32>
      %190 = vector.extract_strided_slice %150 {offsets = [6, 0], sizes = [1, 128], strides = [1, 1]} : vector<8x128xf32> to vector<1x128xf32>
      %191 = vector.broadcast %190 : vector<1x128xf32> to vector<8x128xf32>
      %192 = arith.addf %23, %191 : vector<8x128xf32>
      %193 = arith.cmpf ogt, %192, %189 : vector<8x128xf32>
      %c6_i32_76 = arith.constant 6 : i32
      %194 = vector.broadcast %c6_i32_76 : i32 to vector<8x128xi32>
      %195 = arith.select %193, %194, %188 : vector<8x128xi1>, vector<8x128xi32>
      %196 = arith.maximumf %189, %192 : vector<8x128xf32>
      %197 = vector.extract_strided_slice %150 {offsets = [7, 0], sizes = [1, 128], strides = [1, 1]} : vector<8x128xf32> to vector<1x128xf32>
      %198 = vector.broadcast %197 : vector<1x128xf32> to vector<8x128xf32>
      %199 = arith.addf %26, %198 : vector<8x128xf32>
      %200 = arith.cmpf ogt, %199, %196 : vector<8x128xf32>
      %c7_i32_77 = arith.constant 7 : i32
      %201 = vector.broadcast %c7_i32_77 : i32 to vector<8x128xi32>
      %202 = arith.select %200, %201, %195 : vector<8x128xi1>, vector<8x128xi32>
      %203 = arith.maximumf %196, %199 : vector<8x128xf32>
      %204 = vector.shape_cast %140 : vector<1x128xi1> to vector<1x128xi1>
      %205 = vector.broadcast %204 : vector<1x128xi1> to vector<8x128xi1>
      %206 = arith.select %205, %202, %1 : vector<8x128xi1>, vector<8x128xi32>
      %207 = arith.index_cast %132 : i32 to index
      %c0_78 = arith.constant 0 : index
      %c0_79 = arith.constant 0 : index
      %208 = vector.load %arg8[%207, %c0_78, %c0_79] : memref<8x8x128xi32, #tpu.memory_space<vmem>>, vector<1x8x128xi32>
      %209 = vector.shape_cast %208 : vector<1x8x128xi32> to vector<8x128xi32>
      %210 = vector.shape_cast %206 : vector<8x128xi32> to vector<1x8x128xi32>
      tpu.vector_store %arg8[%207, %c0_78, %c0_79], %210 {strides = array<i32>} : memref<8x8x128xi32, #tpu.memory_space<vmem>>, vector<1x8x128xi32>,
      %211 = arith.addf %203, %136 : vector<8x128xf32>
      %212 = vector.shape_cast %140 : vector<1x128xi1> to vector<1x128xi1>
      %213 = vector.broadcast %212 : vector<1x128xi1> to vector<8x128xi1>
      %214 = arith.select %213, %211, %150 : vector<8x128xi1>, vector<8x128xf32>
      %c0_80 = arith.constant 0 : index
      %c0_81 = arith.constant 0 : index
      %215 = vector.load %arg9[%c0_80, %c0_81] : memref<8x128xf32, #tpu.memory_space<vmem>>, vector<8x128xf32>
      tpu.vector_store %arg9[%c0_80, %c0_81], %214 {strides = array<i32>} : memref<8x128xf32, #tpu.memory_space<vmem>>, vector<8x128xf32>,
    } else {
    }
    %c8_i32_65 = arith.constant 8 : i32
    %c0_i32_66 = arith.constant 0 : i32
    %147 = arith.cmpi eq, %arg1, %c0_i32_66 : i32
    %148 = arith.extui %147 : i1 to i32
    %c0_i32_67 = arith.constant 0 : i32
    %149 = arith.cmpi ne, %148, %c0_i32_67 : i32
    scf.if %149 {
      %c0_68 = arith.constant 0 : index
      %c0_69 = arith.constant 0 : index
      %150 = vector.load %arg9[%c0_68, %c0_69] : memref<8x128xf32, #tpu.memory_space<vmem>>, vector<8x128xf32>
      %c0_70 = arith.constant 0 : index
      %c2 = arith.constant 2 : index
      %151 = vector.load %arg4[%c0_70, %c2] : memref<8x8xf32, #tpu.memory_space<vmem>>, vector<8x1xf32>
      %152 = vector.shape_cast %151 : vector<8x1xf32> to vector<8x1xf32>
      %153 = vector.broadcast %152 : vector<8x1xf32> to vector<8x128xf32>
      %154 = arith.addf %150, %153 : vector<8x128xf32>
      %cst = arith.constant dense<0xFF800000> : vector<128xf32>
      %155 = vector.multi_reduction <maximumf>, %154, %cst [0] : vector<8x128xf32> to vector<128xf32>
      %156 = vector.shape_cast %155 : vector<128xf32> to vector<1x128xf32>
      %157 = vector.broadcast %156 : vector<1x128xf32> to vector<8x128xf32>
      %158 = arith.cmpf oeq, %154, %157 : vector<8x128xf32>
      %c8_i32_71 = arith.constant 8 : i32
      %159 = vector.broadcast %c8_i32_71 : i32 to vector<8x128xi32>
      %160 = arith.select %158, %1, %159 : vector<8x128xi1>, vector<8x128xi32>
      %cst_72 = arith.constant dense<2147483647> : vector<128xi32>
      %161 = vector.multi_reduction <minsi>, %160, %cst_72 [0] : vector<8x128xi32> to vector<128xi32>
      %162 = vector.shape_cast %161 : vector<128xi32> to vector<1x128xi32>
      %c0_73 = arith.constant 0 : index
      %c0_74 = arith.constant 0 : index
      %163 = vector.load %arg7[%c0_73, %c0_74] : memref<1x128xf32, #tpu.memory_space<vmem>>, vector<1x128xf32>
      tpu.vector_store %arg7[%c0_73, %c0_74], %156 {strides = array<i32>} : memref<1x128xf32, #tpu.memory_space<vmem>>, vector<1x128xf32>,
      %c7 = arith.constant 7 : index
      %c0_75 = arith.constant 0 : index
      %164 = vector.load %arg6[%c7, %c0_75] : memref<8x128xi32, #tpu.memory_space<vmem>>, vector<1x128xi32>
      tpu.vector_store %arg6[%c7, %c0_75], %162 {strides = array<i32>} : memref<8x128xi32, #tpu.memory_space<vmem>>, vector<1x128xi32>,
      %c0_i32_76 = arith.constant 0 : i32
      %c7_i32_77 = arith.constant 7 : i32
      %165 = arith.subi %c7_i32_77, %c0_i32_76 : i32
      %166 = arith.index_cast %165 : i32 to index
      %c0_78 = arith.constant 0 : index
      %c0_79 = arith.constant 0 : index
      %167 = vector.load %arg8[%166, %c0_78, %c0_79] : memref<8x8x128xi32, #tpu.memory_space<vmem>>, vector<1x8x128xi32>
      %168 = vector.shape_cast %167 : vector<1x8x128xi32> to vector<8x128xi32>
      %169 = vector.broadcast %162 : vector<1x128xi32> to vector<8x128xi32>
      %170 = arith.cmpi eq, %1, %169 : vector<8x128xi32>
      %c0_i32_80 = arith.constant 0 : i32
      %171 = vector.broadcast %c0_i32_80 : i32 to vector<8x128xi32>
      %172 = arith.select %170, %168, %171 : vector<8x128xi1>, vector<8x128xi32>
      %cst_81 = arith.constant dense<0> : vector<128xi32>
      %173 = vector.multi_reduction <add>, %172, %cst_81 [0] : vector<8x128xi32> to vector<128xi32>
      %174 = vector.shape_cast %173 : vector<128xi32> to vector<1x128xi32>
      %c1_i32_82 = arith.constant 1 : i32
      %175 = arith.subi %165, %c1_i32_82 : i32
      %176 = arith.index_cast %175 : i32 to index
      %c0_83 = arith.constant 0 : index
      %177 = vector.load %arg6[%176, %c0_83] : memref<8x128xi32, #tpu.memory_space<vmem>>, vector<1x128xi32>
      tpu.vector_store %arg6[%176, %c0_83], %174 {strides = array<i32>} : memref<8x128xi32, #tpu.memory_space<vmem>>, vector<1x128xi32>,
      %c1_i32_84 = arith.constant 1 : i32
      %c7_i32_85 = arith.constant 7 : i32
      %178 = arith.subi %c7_i32_85, %c1_i32_84 : i32
      %179 = arith.index_cast %178 : i32 to index
      %c0_86 = arith.constant 0 : index
      %c0_87 = arith.constant 0 : index
      %180 = vector.load %arg8[%179, %c0_86, %c0_87] : memref<8x8x128xi32, #tpu.memory_space<vmem>>, vector<1x8x128xi32>
      %181 = vector.shape_cast %180 : vector<1x8x128xi32> to vector<8x128xi32>
      %182 = vector.broadcast %174 : vector<1x128xi32> to vector<8x128xi32>
      %183 = arith.cmpi eq, %1, %182 : vector<8x128xi32>
      %c0_i32_88 = arith.constant 0 : i32
      %184 = vector.broadcast %c0_i32_88 : i32 to vector<8x128xi32>
      %185 = arith.select %183, %181, %184 : vector<8x128xi1>, vector<8x128xi32>
      %cst_89 = arith.constant dense<0> : vector<128xi32>
      %186 = vector.multi_reduction <add>, %185, %cst_89 [0] : vector<8x128xi32> to vector<128xi32>
      %187 = vector.shape_cast %186 : vector<128xi32> to vector<1x128xi32>
      %c1_i32_90 = arith.constant 1 : i32
      %188 = arith.subi %178, %c1_i32_90 : i32
      %189 = arith.index_cast %188 : i32 to index
      %c0_91 = arith.constant 0 : index
      %190 = vector.load %arg6[%189, %c0_91] : memref<8x128xi32, #tpu.memory_space<vmem>>, vector<1x128xi32>
      tpu.vector_store %arg6[%189, %c0_91], %187 {strides = array<i32>} : memref<8x128xi32, #tpu.memory_space<vmem>>, vector<1x128xi32>,
      %c2_i32_92 = arith.constant 2 : i32
      %c7_i32_93 = arith.constant 7 : i32
      %191 = arith.subi %c7_i32_93, %c2_i32_92 : i32
      %192 = arith.index_cast %191 : i32 to index
      %c0_94 = arith.constant 0 : index
      %c0_95 = arith.constant 0 : index
      %193 = vector.load %arg8[%192, %c0_94, %c0_95] : memref<8x8x128xi32, #tpu.memory_space<vmem>>, vector<1x8x128xi32>
      %194 = vector.shape_cast %193 : vector<1x8x128xi32> to vector<8x128xi32>
      %195 = vector.broadcast %187 : vector<1x128xi32> to vector<8x128xi32>
      %196 = arith.cmpi eq, %1, %195 : vector<8x128xi32>
      %c0_i32_96 = arith.constant 0 : i32
      %197 = vector.broadcast %c0_i32_96 : i32 to vector<8x128xi32>
      %198 = arith.select %196, %194, %197 : vector<8x128xi1>, vector<8x128xi32>
      %cst_97 = arith.constant dense<0> : vector<128xi32>
      %199 = vector.multi_reduction <add>, %198, %cst_97 [0] : vector<8x128xi32> to vector<128xi32>
      %200 = vector.shape_cast %199 : vector<128xi32> to vector<1x128xi32>
      %c1_i32_98 = arith.constant 1 : i32
      %201 = arith.subi %191, %c1_i32_98 : i32
      %202 = arith.index_cast %201 : i32 to index
      %c0_99 = arith.constant 0 : index
      %203 = vector.load %arg6[%202, %c0_99] : memref<8x128xi32, #tpu.memory_space<vmem>>, vector<1x128xi32>
      tpu.vector_store %arg6[%202, %c0_99], %200 {strides = array<i32>} : memref<8x128xi32, #tpu.memory_space<vmem>>, vector<1x128xi32>,
      %c3_i32_100 = arith.constant 3 : i32
      %c7_i32_101 = arith.constant 7 : i32
      %204 = arith.subi %c7_i32_101, %c3_i32_100 : i32
      %205 = arith.index_cast %204 : i32 to index
      %c0_102 = arith.constant 0 : index
      %c0_103 = arith.constant 0 : index
      %206 = vector.load %arg8[%205, %c0_102, %c0_103] : memref<8x8x128xi32, #tpu.memory_space<vmem>>, vector<1x8x128xi32>
      %207 = vector.shape_cast %206 : vector<1x8x128xi32> to vector<8x128xi32>
      %208 = vector.broadcast %200 : vector<1x128xi32> to vector<8x128xi32>
      %209 = arith.cmpi eq, %1, %208 : vector<8x128xi32>
      %c0_i32_104 = arith.constant 0 : i32
      %210 = vector.broadcast %c0_i32_104 : i32 to vector<8x128xi32>
      %211 = arith.select %209, %207, %210 : vector<8x128xi1>, vector<8x128xi32>
      %cst_105 = arith.constant dense<0> : vector<128xi32>
      %212 = vector.multi_reduction <add>, %211, %cst_105 [0] : vector<8x128xi32> to vector<128xi32>
      %213 = vector.shape_cast %212 : vector<128xi32> to vector<1x128xi32>
      %c1_i32_106 = arith.constant 1 : i32
      %214 = arith.subi %204, %c1_i32_106 : i32
      %215 = arith.index_cast %214 : i32 to index
      %c0_107 = arith.constant 0 : index
      %216 = vector.load %arg6[%215, %c0_107] : memref<8x128xi32, #tpu.memory_space<vmem>>, vector<1x128xi32>
      tpu.vector_store %arg6[%215, %c0_107], %213 {strides = array<i32>} : memref<8x128xi32, #tpu.memory_space<vmem>>, vector<1x128xi32>,
      %c4_i32_108 = arith.constant 4 : i32
      %c7_i32_109 = arith.constant 7 : i32
      %217 = arith.subi %c7_i32_109, %c4_i32_108 : i32
      %218 = arith.index_cast %217 : i32 to index
      %c0_110 = arith.constant 0 : index
      %c0_111 = arith.constant 0 : index
      %219 = vector.load %arg8[%218, %c0_110, %c0_111] : memref<8x8x128xi32, #tpu.memory_space<vmem>>, vector<1x8x128xi32>
      %220 = vector.shape_cast %219 : vector<1x8x128xi32> to vector<8x128xi32>
      %221 = vector.broadcast %213 : vector<1x128xi32> to vector<8x128xi32>
      %222 = arith.cmpi eq, %1, %221 : vector<8x128xi32>
      %c0_i32_112 = arith.constant 0 : i32
      %223 = vector.broadcast %c0_i32_112 : i32 to vector<8x128xi32>
      %224 = arith.select %222, %220, %223 : vector<8x128xi1>, vector<8x128xi32>
      %cst_113 = arith.constant dense<0> : vector<128xi32>
      %225 = vector.multi_reduction <add>, %224, %cst_113 [0] : vector<8x128xi32> to vector<128xi32>
      %226 = vector.shape_cast %225 : vector<128xi32> to vector<1x128xi32>
      %c1_i32_114 = arith.constant 1 : i32
      %227 = arith.subi %217, %c1_i32_114 : i32
      %228 = arith.index_cast %227 : i32 to index
      %c0_115 = arith.constant 0 : index
      %229 = vector.load %arg6[%228, %c0_115] : memref<8x128xi32, #tpu.memory_space<vmem>>, vector<1x128xi32>
      tpu.vector_store %arg6[%228, %c0_115], %226 {strides = array<i32>} : memref<8x128xi32, #tpu.memory_space<vmem>>, vector<1x128xi32>,
      %c5_i32_116 = arith.constant 5 : i32
      %c7_i32_117 = arith.constant 7 : i32
      %230 = arith.subi %c7_i32_117, %c5_i32_116 : i32
      %231 = arith.index_cast %230 : i32 to index
      %c0_118 = arith.constant 0 : index
      %c0_119 = arith.constant 0 : index
      %232 = vector.load %arg8[%231, %c0_118, %c0_119] : memref<8x8x128xi32, #tpu.memory_space<vmem>>, vector<1x8x128xi32>
      %233 = vector.shape_cast %232 : vector<1x8x128xi32> to vector<8x128xi32>
      %234 = vector.broadcast %226 : vector<1x128xi32> to vector<8x128xi32>
      %235 = arith.cmpi eq, %1, %234 : vector<8x128xi32>
      %c0_i32_120 = arith.constant 0 : i32
      %236 = vector.broadcast %c0_i32_120 : i32 to vector<8x128xi32>
      %237 = arith.select %235, %233, %236 : vector<8x128xi1>, vector<8x128xi32>
      %cst_121 = arith.constant dense<0> : vector<128xi32>
      %238 = vector.multi_reduction <add>, %237, %cst_121 [0] : vector<8x128xi32> to vector<128xi32>
      %239 = vector.shape_cast %238 : vector<128xi32> to vector<1x128xi32>
      %c1_i32_122 = arith.constant 1 : i32
      %240 = arith.subi %230, %c1_i32_122 : i32
      %241 = arith.index_cast %240 : i32 to index
      %c0_123 = arith.constant 0 : index
      %242 = vector.load %arg6[%241, %c0_123] : memref<8x128xi32, #tpu.memory_space<vmem>>, vector<1x128xi32>
      tpu.vector_store %arg6[%241, %c0_123], %239 {strides = array<i32>} : memref<8x128xi32, #tpu.memory_space<vmem>>, vector<1x128xi32>,
      %c6_i32_124 = arith.constant 6 : i32
      %c7_i32_125 = arith.constant 7 : i32
      %243 = arith.subi %c7_i32_125, %c6_i32_124 : i32
      %244 = arith.index_cast %243 : i32 to index
      %c0_126 = arith.constant 0 : index
      %c0_127 = arith.constant 0 : index
      %245 = vector.load %arg8[%244, %c0_126, %c0_127] : memref<8x8x128xi32, #tpu.memory_space<vmem>>, vector<1x8x128xi32>
      %246 = vector.shape_cast %245 : vector<1x8x128xi32> to vector<8x128xi32>
      %247 = vector.broadcast %239 : vector<1x128xi32> to vector<8x128xi32>
      %248 = arith.cmpi eq, %1, %247 : vector<8x128xi32>
      %c0_i32_128 = arith.constant 0 : i32
      %249 = vector.broadcast %c0_i32_128 : i32 to vector<8x128xi32>
      %250 = arith.select %248, %246, %249 : vector<8x128xi1>, vector<8x128xi32>
      %cst_129 = arith.constant dense<0> : vector<128xi32>
      %251 = vector.multi_reduction <add>, %250, %cst_129 [0] : vector<8x128xi32> to vector<128xi32>
      %252 = vector.shape_cast %251 : vector<128xi32> to vector<1x128xi32>
      %c1_i32_130 = arith.constant 1 : i32
      %253 = arith.subi %243, %c1_i32_130 : i32
      %254 = arith.index_cast %253 : i32 to index
      %c0_131 = arith.constant 0 : index
      %255 = vector.load %arg6[%254, %c0_131] : memref<8x128xi32, #tpu.memory_space<vmem>>, vector<1x128xi32>
      tpu.vector_store %arg6[%254, %c0_131], %252 {strides = array<i32>} : memref<8x128xi32, #tpu.memory_space<vmem>>, vector<1x128xi32>,
      %c7_i32_132 = arith.constant 7 : i32
    } else {
    }
    return
  }
  func.func @transform_0(%arg0: i32, %arg1: i32) -> (i32, i32) {
    %c0_i32 = arith.constant 0 : i32
    return %arg1, %arg0 : i32, i32
  }
  func.func @transform_1(%arg0: i32, %arg1: i32) -> (i32, i32, i32) {
    %c0_i32 = arith.constant 0 : i32
    %c0_i32_0 = arith.constant 0 : i32
    return %arg1, %c0_i32, %arg0 : i32, i32, i32
  }
  func.func @transform_2(%arg0: i32, %arg1: i32) -> (i32, i32) {
    %c0_i32 = arith.constant 0 : i32
    %c0_i32_0 = arith.constant 0 : i32
    %c0_i32_1 = arith.constant 0 : i32
    return %c0_i32, %c0_i32_0 : i32, i32
  }
  func.func @transform_3(%arg0: i32, %arg1: i32) -> (i32, i32) {
    %c0_i32 = arith.constant 0 : i32
    %c0_i32_0 = arith.constant 0 : i32
    %c0_i32_1 = arith.constant 0 : i32
    return %c0_i32, %c0_i32_0 : i32, i32
  }
  func.func @transform_4(%arg0: i32, %arg1: i32) -> (i32, i32) {
    %c0_i32 = arith.constant 0 : i32
    %c0_i32_0 = arith.constant 0 : i32
    return %c0_i32, %arg0 : i32, i32
  }
  func.func @transform_5(%arg0: i32, %arg1: i32) -> (i32, i32) {
    %c0_i32 = arith.constant 0 : i32
    %c0_i32_0 = arith.constant 0 : i32
    return %c0_i32, %arg0 : i32, i32
  }
}

</mosaic_0001>

<bundles_post_ra>
// kernel: tpu_custom_call.1
= control target key start
LH: loop header
LB: loop body
LE: loop exit
PB: predicated region body
PF: predicated region fallthrough
CT: control target
= control target key end

     0   :  { %11 = vsyncpa [#allocation5], 0  ;;  %s1529_s0 = inlined_call_operand.hbm [shape: s32[8,128], index: 0, kind: input, shape index: {}]   ;;  %s1530_s1 = inlined_call_operand.hbm [shape: bf16[8,8,128], index: 1, kind: input, shape index: {}]   ;;  %s1531_s2 = inlined_call_operand.hbm [shape: f32[8,8], index: 2, kind: input, shape index: {}]   ;;  %s1532_s3 = inlined_call_operand.vmem [shape: f32[8,8], index: 3, kind: input, shape index: {}]   ;;  %s1533_s4 = inlined_call_operand.hbm [shape: s32[8,128], index: 4, kind: output, shape index: {0}]   ;;  %s1534_s5 = inlined_call_operand.hbm [shape: f32[1,128], index: 5, kind: output, shape index: {1}]  }
   0x1   :  { %12 = vsyncpa [#allocation8], 0 }
   0x2   :  { %13 = vsyncpa [#allocation6], 0 }
   0x3   :  { %14 = vsyncpa [#allocation12], 0  ;;  %s1112_s18 = smov [#allocation7]   ;;  %s994_s22 = scalar_lea.hbm %s1530_s1, 512 }
   0x4   :  { %s30_s19 = sshll.u32 %s1112_s18, 4  ;;  %p995_p0 = scmp.ne.s32.totalorder %s1530_s1, %s994_s22  ;;  %s31_s19 = int_to_ptr.vmem [resolvable:$true] %s30_s19 }
   0x5   :  { %p998_p1 = scmp.lt.u32.totalorder %s994_s22, %s1530_s1 }
   0x7   :  { %p1000_p2 = pnand %p998_p1, %p995_p0 }
   0x9   :  { %1003 = shalt.err (!%p1000_p2)
}
   0xa   :  { %s1004_s27 = scalar_lea.vmem %s31_s19, 512  ;;  %p1009_p4 = scmp.lt.s32.totalorder %s31_s19, %s31_s19 }
   0xb   :  { %p1005_p3 = scmp.ne.s32.totalorder %s31_s19, %s1004_s27  ;;  %p1010_p5 = scmp.lt.s32.totalorder %s1004_s27, %s1004_s27 }
   0xd   :  { %p1011_p6 = por %p1010_p5, %p1009_p4 }
   0xf   :  { %p1012_p7 = pnand %p1011_p6, %p1005_p3 }
  0x11   :  { %1015 = shalt.err (!%p1012_p7)
}
  0x12   :  { %s1113_s28 = smov 64   ;;  %s1114_s29 = smov 4  }
  0x13   :  { %36 = dma.hbm_to_vmem [thread:$0]  %s1530_s1, 512, %s31_s19, [#allocation8], %s1113_s28, %s1113_s28, %s1114_s29  }
  0x14   :  { %s1115_s7 = smov [#allocation4]   ;;  %s1116_s9 = smov [#allocation9]  }
  0x15   :  { %s21_s8 = sshll.u32 %s1115_s7, 4  ;;  %s43_s10 = sshll.u32 %s1116_s9, 4  ;;  %s22_s8 = int_to_ptr.vmem [resolvable:$true] %s21_s8  ;;  %s44_s10 = int_to_ptr.vmem [resolvable:$true] %s43_s10 }
  0x16   :  { %s1016_s13 = scalar_lea.hbm %s1529_s0, 128 }
  0x17   :  { %p1017_p8 = scmp.ne.s32.totalorder %s1529_s0, %s1016_s13  ;;  %p1020_p9 = scmp.lt.u32.totalorder %s1016_s13, %s1529_s0 }
  0x19   :  { %p1022_p10 = pnand %p1020_p9, %p1017_p8 }
  0x1b   :  { %1025 = shalt.err (!%p1022_p10)
}
  0x1c   :  { %s1026_s1 = scalar_lea.vmem %s22_s8, 128  ;;  %p1031_p12 = scmp.lt.s32.totalorder %s22_s8, %s22_s8 }
  0x1d   :  { %p1027_p11 = scmp.ne.s32.totalorder %s22_s8, %s1026_s1  ;;  %p1032_p13 = scmp.lt.s32.totalorder %s1026_s1, %s1026_s1 }
  0x1f   :  { %p1033_p0 = por %p1032_p13, %p1031_p12 }
  0x21   :  { %p1034_p1 = pnand %p1033_p0, %p1027_p11 }
  0x23   :  { %1037 = shalt.err (!%p1034_p1)
}
  0x24   :  { %24 = dma.hbm_to_vmem [thread:$0]  %s1529_s0, 128, %s22_s8, [#allocation5]  }
  0x25   :  { %s1038_s22 = scalar_lea.hbm %s1531_s2, 128 }
  0x26   :  { %p1039_p2 = scmp.ne.s32.totalorder %s1531_s2, %s1038_s22  ;;  %p1042_p3 = scmp.lt.u32.totalorder %s1038_s22, %s1531_s2 }
  0x28   :  { %p1044_p4 = pnand %p1042_p3, %p1039_p2 }
  0x2a   :  { %1047 = shalt.err (!%p1044_p4)
}
  0x2b   :  { %s1048_s27 = scalar_lea.vmem %s44_s10, 128  ;;  %p1053_p6 = scmp.lt.s32.totalorder %s44_s10, %s44_s10 }
  0x2c   :  { %p1049_p5 = scmp.ne.s32.totalorder %s44_s10, %s1048_s27  ;;  %p1054_p7 = scmp.lt.s32.totalorder %s1048_s27, %s1048_s27 }
  0x2e   :  { %p1055_p8 = por %p1054_p7, %p1053_p6 }
  0x30   :  { %p1056_p9 = pnand %p1055_p8, %p1049_p5 }
  0x32   :  { %1059 = shalt.err (!%p1056_p9)
}
  0x33   :  { %46 = dma.hbm_to_vmem [thread:$0]  %s1531_s2, 128, %s44_s10, [#allocation8]  }
  0x34   :  { %1104 = dma.done.wait [#allocation5], 128  }
  0x35   :  { %1105 = vsyncadd [#allocation5], 4294967168 }
  0x36   :  { %1106 = dma.done.wait [#allocation8], 640  }
  0x37   :  { %1107 = vsyncadd [#allocation8], 4294966656  ;;  %v1117_v0 = vmov 2   ;;  %v1118_v1 = vmov 1   ;;  %v61_v2 = vld [vmem:[%s1532_s3] sm:$0xff]  ;;  %v1119_v3 = vmov 3   ;;  %v59_v10 = vlaneseq }
  0x38   :  { %987 = vset.pattern.permute.xlu1 %v1117_v0  ;;  %985 = vset.pattern.permute.xlu0 %v1118_v1  ;;  %v1120_v4 = vmov 0   ;;  %v1121_v5 = vmov 4   ;;  %v1122_v6 = vmov 5   ;;  %v1123_v7 = vmov 6   ;;  %v826_v9 = vld [vmem:[#allocation9] sm:$0xff]  ;;  %s1125_s2 = smov [#allocation11]  }
  0x39   :  { %72 = vperm.xlu1 %987, %v61_v2   ;;  %68 = vperm.xlu0 %985, %v61_v2   ;;  %v1124_v8 = vmov 7   ;;  %v1197_v11 = vld [vmem:[#allocation7] sm:$0xff]   ;;  %v1199_v12 = vshrl.u32 %v59_v10, 7  ;;  %v188_v35 = vld [vmem:[#allocation4 + $0x1] sm:$0x1]  ;;  %s945_s3 = sshll.u32 %s1125_s2, 4  ;;  %s946_s3 = int_to_ptr.vmem [resolvable:$true] %s945_s3 }
  0x3a   :  { %v968_v13 = vunpack.c.l.bf16 %v1197_v11  ;;  %vm189_vm2 = vcmp.ne.s32.totalorder %v188_v35, 0  ;;  %v969_v60 = vunpack.c.h.bf16 %v1197_v11  ;;  %s1060_s6 = scalar_lea.vmem %s946_s3, 16  ;;  %s1064_s7 = scalar_lea.vmem %s946_s3, 32 }
  0x3b   :  { %v1203_v14 = vsub.s32 0, %v1199_v12  ;;  %v1206_v15 = vsub.s32 1, %v1199_v12  ;;  %v1213_v18 = vsub.s32 2, %v1199_v12  ;;  %v1217_v20 = vsub.s32 3, %v1199_v12  ;;  %p1061_p10 = scmp.ne.s32.totalorder %s946_s3, %s1060_s6  ;;  %p1065_p11 = scmp.lt.s32.totalorder %s946_s3, %s946_s3 }
  0x3c   :  { %v1228_v27 = vsub.s32 4, %v1199_v12  ;;  %v1234_v32 = vsub.s32 5, %v1199_v12  ;;  %v1242_v39 = vsub.s32 6, %v1199_v12  ;;  %v1253_v50 = vsub.s32 7, %v1199_v12  ;;  %p1066_p12 = scmp.lt.s32.totalorder %s1064_s7, %s1060_s6 }
  0x3d   :  { %988 = vset.pattern.permute.xlu1 %v1119_v3  ;;  %986 = vset.pattern.permute.xlu0 %v1120_v4  ;;  %v262_v51 = vsel %vm189_vm2, 1, %v1120_v4 }
  0x3e   :  { %76 = vperm.xlu1 %988, %v61_v2   ;;  %64 = vperm.xlu0 %986, %v61_v2   ;;  %v266_v56 = vrot.slane %v262_v51, %v1203_v14  ;;  %p1067_p13 = por %p1066_p12, %p1065_p11 }
  0x40   :  { %vm1263_vm7 = vcmp.eq.s32.totalorder %v266_v56, 1  ;;  %p1068_p0 = pnand %p1067_p13, %p1061_p10 }
  0x42   :  { %989 = vset.pattern.permute.xlu1 %v1121_v5  ;;  %990 = vset.pattern.permute.xlu0 %v1122_v6  ;;  %v279_v6 = vld [vmem:[#allocation4 + $0x2] sm:$0x1] }
  0x43   :  { %80 = vperm.xlu1 %989, %v61_v2   ;;  %84 = vperm.xlu0 %990, %v61_v2   ;;  %vm280_vm9 = vcmp.ne.s32.totalorder %v279_v6, 0 }
  0x47   :  { %991 = vset.pattern.permute.xlu1 %v1123_v7  ;;  %993 = vset.pattern.permute.xlu0 %v1117_v0 }
  0x48   :  { %88 = vperm.xlu1 %991, %v61_v2   ;;  %829 = vperm.xlu0 %993, %v826_v9  }
  0x4c   :  { %992 = vset.pattern.permute.xlu1 %v1124_v8 }
  0x4d   :  { %92 = vperm.xlu1 %992, %v61_v2  }
  0xb8   :  { %v1208_v16 = vpop.permute.xlu1 %72  ;;  %v1210_v17 = vpop.permute.xlu0 %68 }
  0xb9   :  { %v103_v19 = vadd.f32 %v968_v13, %v1210_v17 }
  0xbb   :  { %v204_v21 = vrot.slane %v103_v19, %v1203_v14  ;;  %v209_v22 = vrot.slane %v103_v19, %v1206_v15  ;;  %v217_v23 = vrot.slane %v103_v19, %v1213_v18  ;;  %v225_v28 = vrot.slane %v103_v19, %v1217_v20 }
  0xbc   :  { %v233_v34 = vrot.slane %v103_v19, %v1228_v27  ;;  %v241_v44 = vrot.slane %v103_v19, %v1234_v32  ;;  %v249_v48 = vrot.slane %v103_v19, %v1242_v39  ;;  %v257_v58 = vrot.slane %v103_v19, %v1253_v50 }
  0xbd   :  { %v1222_v24 = vpop.permute.xlu1 %76  ;;  %v210_v25 = vadd.f32 %v209_v22, %v1210_v17  ;;  %v1225_v26 = vpop.permute.xlu0 %64  ;;  %v218_v30 = vadd.f32 %v217_v23, %v1208_v16 }
  0xbe   :  { %v205_v29 = vadd.f32 %v204_v21, %v1225_v26  ;;  %v226_v36 = vadd.f32 %v225_v28, %v1222_v24 }
  0xc0   :  { %vm211_vm0 = vcmp.gt.f32.partialorder %v210_v25, %v205_v29  ;;  %v213_v31 = vmax.f32 %v205_v29, %v210_v25 }
  0xc1   :  { %v212_v33 = vsel %vm211_vm0, 1, %v1120_v4 }
  0xc2   :  { %vm219_vm1 = vcmp.gt.f32.partialorder %v218_v30, %v213_v31  ;;  %v221_v37 = vmax.f32 %v213_v31, %v218_v30  ;;  %v1239_v38 = vpop.permute.xlu1 %80  ;;  %v1245_v42 = vpop.permute.xlu0 %84  ;;  %v353_v30 = vsel %vm280_vm9, 1, %v1120_v4 }
  0xc3   :  { %v220_v40 = vsel %vm219_vm1, 2, %v212_v33  ;;  %v234_v41 = vadd.f32 %v233_v34, %v1239_v38  ;;  %v242_v47 = vadd.f32 %v241_v44, %v1245_v42  ;;  %v357_v44 = vrot.slane %v353_v30, %v1203_v14 }
  0xc4   :  { %v229_v43 = vmax.f32 %v221_v37, %v226_v36  ;;  %vm227_vm3 = vcmp.gt.f32.partialorder %v226_v36, %v221_v37 }
  0xc5   :  { %v228_v45 = vsel %vm227_vm3, 3, %v220_v40  ;;  %vm1297_vm0 = vcmp.eq.s32.totalorder %v357_v44, 1 }
  0xc6   :  { %vm235_vm4 = vcmp.gt.f32.partialorder %v234_v41, %v229_v43  ;;  %v237_v46 = vmax.f32 %v229_v43, %v234_v41  ;;  %v1291_v43 = vld [vmem:[#allocation7 + $0x8] sm:$0xff]  }
  0xc7   :  { %v1250_v49 = vpop.permute.xlu1 %88  ;;  %v236_v52 = vsel %vm235_vm4, 4, %v228_v45  ;;  %v278_v51 = vunpack.c.l.bf16 %v1291_v43 }
  0xc8   :  { %vm243_vm5 = vcmp.gt.f32.partialorder %v242_v47, %v237_v46  ;;  %v245_v53 = vmax.f32 %v237_v46, %v242_v47  ;;  %v250_v54 = vadd.f32 %v249_v48, %v1250_v49 }
  0xc9   :  { %v244_v55 = vsel %vm243_vm5, 5, %v236_v52 }
  0xca   :  { %vm251_vm6 = vcmp.gt.f32.partialorder %v250_v54, %v245_v53  ;;  %v253_v61 = vmax.f32 %v245_v53, %v250_v54 }
  0xcb   :  { %v252_v57 = vsel %vm251_vm6, 6, %v244_v55 }
  0xcc   :  { %v1259_v59 = vpop.permute.xlu1 %92 }
  0xcd   :  { %v258_v62 = vadd.f32 %v257_v58, %v1259_v59 }
  0xcf   :  { %vm259_vm8 = vcmp.gt.f32.partialorder %v258_v62, %v253_v61  ;;  %v261_v0 = vmax.f32 %v253_v61, %v258_v62  ;;  %v370_v62 = vld [vmem:[#allocation4 + $0x3] sm:$0x1] }
  0xd0   :  { %v1267_v1 = vsel %vm259_vm8, 7, %v252_v57  ;;  %vm371_vm2 = vcmp.ne.s32.totalorder %v370_v62, 0 }
  0xd1   :  { %v268_v2 = vsel %vm1263_vm7, %v1267_v1, %v1199_v12  ;;  %v272_v3 = vadd.f32 %v969_v60, %v261_v0 }
  0xd3   :  { %v273_v5 = vsel %vm1263_vm7, %v272_v3, %v103_v19 }
  0xd4   :  { %v295_v7 = vrot.slane %v273_v5, %v1203_v14  ;;  %v300_v8 = vrot.slane %v273_v5, %v1206_v15  ;;  %v308_v9 = vrot.slane %v273_v5, %v1213_v18  ;;  %v316_v13 = vrot.slane %v273_v5, %v1217_v20 }
  0xd5   :  { %v324_v19 = vrot.slane %v273_v5, %v1228_v27  ;;  %v332_v29 = vrot.slane %v273_v5, %v1234_v32  ;;  %v340_v35 = vrot.slane %v273_v5, %v1242_v39  ;;  %v348_v41 = vrot.slane %v273_v5, %v1253_v50 }
  0xd6   :  { %v296_v10 = vadd.f32 %v295_v7, %v1225_v26  ;;  %v301_v11 = vadd.f32 %v300_v8, %v1210_v17  ;;  %v309_v22 = vadd.f32 %v308_v9, %v1208_v16  ;;  %v317_v28 = vadd.f32 %v316_v13, %v1222_v24 }
  0xd7   :  { %v325_v34 = vadd.f32 %v324_v19, %v1239_v38  ;;  %v333_v40 = vadd.f32 %v332_v29, %v1245_v42  ;;  %v341_v47 = vadd.f32 %v340_v35, %v1250_v49  ;;  %v349_v53 = vadd.f32 %v348_v41, %v1259_v59 }
  0xd8   :  { %vm302_vm10 = vcmp.gt.f32.partialorder %v301_v11, %v296_v10  ;;  %v304_v21 = vmax.f32 %v296_v10, %v301_v11 }
  0xd9   :  { %v303_v23 = vsel %vm302_vm10, 1, %v1120_v4 }
  0xda   :  { %vm310_vm11 = vcmp.gt.f32.partialorder %v309_v22, %v304_v21  ;;  %v312_v25 = vmax.f32 %v304_v21, %v309_v22 }
  0xdb   :  { %v311_v31 = vsel %vm310_vm11, 2, %v303_v23  ;;  %v444_v23 = vsel %vm371_vm2, 1, %v1120_v4 }
  0xdc   :  { %vm318_vm12 = vcmp.gt.f32.partialorder %v317_v28, %v312_v25  ;;  %v320_v33 = vmax.f32 %v312_v25, %v317_v28 }
  0xdd   :  { %v319_v36 = vsel %vm318_vm12, 3, %v311_v31 }
  0xde   :  { %vm326_vm13 = vcmp.gt.f32.partialorder %v325_v34, %v320_v33  ;;  %v328_v37 = vmax.f32 %v320_v33, %v325_v34 }
  0xdf   :  { %v327_v45 = vsel %vm326_vm13, 4, %v319_v36  ;;  %v448_v36 = vrot.slane %v444_v23, %v1203_v14 }
  0xe0   :  { %vm334_vm14 = vcmp.gt.f32.partialorder %v333_v40, %v328_v37  ;;  %v336_v46 = vmax.f32 %v328_v37, %v333_v40 }
  0xe1   :  { %v335_v48 = vsel %vm334_vm14, 5, %v327_v45  ;;  %v369_v45 = vunpack.c.h.bf16 %v1291_v43  ;;  %vm1329_vm10 = vcmp.eq.s32.totalorder %v448_v36, 1 }
  0xe2   :  { %vm342_vm15 = vcmp.gt.f32.partialorder %v341_v47, %v336_v46  ;;  %v344_v52 = vmax.f32 %v336_v46, %v341_v47 }
  0xe3   :  { %v343_v55 = vsel %vm342_vm15, 6, %v335_v48 }
  0xe4   :  { %vm350_vm1 = vcmp.gt.f32.partialorder %v349_v53, %v344_v52  ;;  %v352_v56 = vmax.f32 %v344_v52, %v349_v53 }
  0xe5   :  { %v1301_v57 = vsel %vm350_vm1, 7, %v343_v55 }
  0xe6   :  { %v359_v58 = vsel %vm1297_vm0, %v1301_v57, %v1199_v12  ;;  %v363_v60 = vadd.f32 %v352_v56, %v278_v51 }
  0xe8   :  { %v364_v61 = vsel %vm1297_vm0, %v363_v60, %v273_v5  ;;  %v461_v60 = vld [vmem:[#allocation4 + $0x4] sm:$0x1] }
  0xe9   :  { %v386_v0 = vrot.slane %v364_v61, %v1203_v14  ;;  %v391_v3 = vrot.slane %v364_v61, %v1206_v15  ;;  %v399_v6 = vrot.slane %v364_v61, %v1213_v18  ;;  %v407_v9 = vrot.slane %v364_v61, %v1217_v20 }
  0xea   :  { %v415_v5 = vrot.slane %v364_v61, %v1228_v27  ;;  %v423_v19 = vrot.slane %v364_v61, %v1234_v32  ;;  %v431_v30 = vrot.slane %v364_v61, %v1242_v39  ;;  %v439_v35 = vrot.slane %v364_v61, %v1253_v50 }
  0xeb   :  { %v387_v7 = vadd.f32 %v386_v0, %v1225_v26  ;;  %v392_v8 = vadd.f32 %v391_v3, %v1210_v17  ;;  %v400_v11 = vadd.f32 %v399_v6, %v1208_v16  ;;  %v408_v22 = vadd.f32 %v407_v9, %v1222_v24 }
  0xec   :  { %v416_v29 = vadd.f32 %v415_v5, %v1239_v38  ;;  %v424_v34 = vadd.f32 %v423_v19, %v1245_v42  ;;  %v432_v41 = vadd.f32 %v431_v30, %v1250_v49  ;;  %v440_v47 = vadd.f32 %v439_v35, %v1259_v59 }
  0xed   :  { %vm393_vm3 = vcmp.gt.f32.partialorder %v392_v8, %v387_v7  ;;  %v395_v10 = vmax.f32 %v387_v7, %v392_v8  ;;  %vm462_vm12 = vcmp.ne.s32.totalorder %v461_v60, 0 }
  0xee   :  { %v394_v13 = vsel %vm393_vm3, 1, %v1120_v4 }
  0xef   :  { %vm401_vm4 = vcmp.gt.f32.partialorder %v400_v11, %v395_v10  ;;  %v403_v21 = vmax.f32 %v395_v10, %v400_v11 }
  0xf0   :  { %v402_v25 = vsel %vm401_vm4, 2, %v394_v13 }
  0xf1   :  { %vm409_vm5 = vcmp.gt.f32.partialorder %v408_v22, %v403_v21  ;;  %v411_v28 = vmax.f32 %v403_v21, %v408_v22  ;;  %v535_v22 = vsel %vm462_vm12, 1, %v1120_v4 }
  0xf2   :  { %v410_v31 = vsel %vm409_vm5, 3, %v402_v25  ;;  %v539_v35 = vrot.slane %v535_v22, %v1203_v14 }
  0xf3   :  { %vm417_vm6 = vcmp.gt.f32.partialorder %v416_v29, %v411_v28  ;;  %v419_v33 = vmax.f32 %v411_v28, %v416_v29 }
  0xf4   :  { %v418_v37 = vsel %vm417_vm6, 4, %v410_v31  ;;  %vm1363_vm4 = vcmp.eq.s32.totalorder %v539_v35, 1 }
  0xf5   :  { %vm425_vm8 = vcmp.gt.f32.partialorder %v424_v34, %v419_v33  ;;  %v427_v40 = vmax.f32 %v419_v33, %v424_v34  ;;  %v1357_v34 = vld [vmem:[#allocation7 + $0x10] sm:$0xff]  }
  0xf6   :  { %v426_v44 = vsel %vm425_vm8, 5, %v418_v37 }
  0xf7   :  { %vm433_vm9 = vcmp.gt.f32.partialorder %v432_v41, %v427_v40  ;;  %v435_v46 = vmax.f32 %v427_v40, %v432_v41 }
  0xf8   :  { %v434_v51 = vsel %vm433_vm9, 6, %v426_v44  ;;  %v460_v44 = vunpack.c.l.bf16 %v1357_v34 }
  0xf9   :  { %vm441_vm11 = vcmp.gt.f32.partialorder %v440_v47, %v435_v46  ;;  %v443_v52 = vmax.f32 %v435_v46, %v440_v47 }
  0xfa   :  { %v1333_v53 = vsel %vm441_vm11, 7, %v434_v51 }
  0xfb   :  { %v450_v55 = vsel %vm1329_vm10, %v1333_v53, %v1199_v12  ;;  %v454_v56 = vadd.f32 %v443_v52, %v369_v45 }
  0xfd   :  { %v455_v43 = vsel %vm1329_vm10, %v454_v56, %v364_v61 }
  0xfe   :  { %v477_v62 = vrot.slane %v455_v43, %v1203_v14  ;;  %v482_v0 = vrot.slane %v455_v43, %v1206_v15  ;;  %v490_v3 = vrot.slane %v455_v43, %v1213_v18  ;;  %v498_v8 = vrot.slane %v455_v43, %v1217_v20 }
  0xff   :  { %v506_v61 = vrot.slane %v455_v43, %v1228_v27  ;;  %v514_v21 = vrot.slane %v455_v43, %v1234_v32  ;;  %v522_v28 = vrot.slane %v455_v43, %v1242_v39  ;;  %v530_v33 = vrot.slane %v455_v43, %v1253_v50 }
 0x100   :  { %v478_v6 = vadd.f32 %v477_v62, %v1225_v26  ;;  %v483_v7 = vadd.f32 %v482_v0, %v1210_v17  ;;  %v491_v10 = vadd.f32 %v490_v3, %v1208_v16  ;;  %v499_v13 = vadd.f32 %v498_v8, %v1222_v24  ;;  %v552_v3 = vld [vmem:[#allocation4 + $0x5] sm:$0x1] }
 0x101   :  { %v507_v25 = vadd.f32 %v506_v61, %v1239_v38  ;;  %v515_v31 = vadd.f32 %v514_v21, %v1245_v42  ;;  %v523_v40 = vadd.f32 %v522_v28, %v1250_v49  ;;  %v531_v46 = vadd.f32 %v530_v33, %v1259_v59 }
 0x102   :  { %vm484_vm13 = vcmp.gt.f32.partialorder %v483_v7, %v478_v6  ;;  %v486_v9 = vmax.f32 %v478_v6, %v483_v7  ;;  %vm553_vm6 = vcmp.ne.s32.totalorder %v552_v3, 0 }
 0x103   :  { %v485_v11 = vsel %vm484_vm13, 1, %v1120_v4 }
 0x104   :  { %vm492_vm14 = vcmp.gt.f32.partialorder %v491_v10, %v486_v9  ;;  %v494_v5 = vmax.f32 %v486_v9, %v491_v10 }
 0x105   :  { %v493_v19 = vsel %vm492_vm14, 2, %v485_v11 }
 0x106   :  { %vm500_vm15 = vcmp.gt.f32.partialorder %v499_v13, %v494_v5  ;;  %v502_v23 = vmax.f32 %v494_v5, %v499_v13 }
 0x107   :  { %v501_v29 = vsel %vm500_vm15, 3, %v493_v19 }
 0x108   :  { %vm508_vm1 = vcmp.gt.f32.partialorder %v507_v25, %v502_v23  ;;  %v510_v30 = vmax.f32 %v502_v23, %v507_v25  ;;  %v626_v23 = vsel %vm553_vm6, 1, %v1120_v4 }
 0x109   :  { %v509_v36 = vsel %vm508_vm1, 4, %v501_v29 }
 0x10a   :  { %vm516_vm2 = vcmp.gt.f32.partialorder %v515_v31, %v510_v30  ;;  %v518_v37 = vmax.f32 %v510_v30, %v515_v31 }
 0x10b   :  { %v517_v41 = vsel %vm516_vm2, 5, %v509_v36 }
 0x10c   :  { %vm524_vm3 = vcmp.gt.f32.partialorder %v523_v40, %v518_v37  ;;  %v526_v45 = vmax.f32 %v518_v37, %v523_v40  ;;  %v630_v37 = vrot.slane %v626_v23, %v1203_v14 }
 0x10d   :  { %v525_v51 = vsel %vm524_vm3, 6, %v517_v41 }
 0x10e   :  { %vm532_vm5 = vcmp.gt.f32.partialorder %v531_v46, %v526_v45  ;;  %v534_v52 = vmax.f32 %v526_v45, %v531_v46  ;;  %v551_v46 = vunpack.c.h.bf16 %v1357_v34  ;;  %vm1395_vm15 = vcmp.eq.s32.totalorder %v630_v37, 1 }
 0x10f   :  { %v1367_v56 = vsel %vm532_vm5, 7, %v525_v51 }
 0x110   :  { %v541_v60 = vsel %vm1363_vm4, %v1367_v56, %v1199_v12  ;;  %v545_v62 = vadd.f32 %v534_v52, %v460_v44 }
 0x112   :  { %v546_v0 = vsel %vm1363_vm4, %v545_v62, %v455_v43 }
 0x113   :  { %v568_v6 = vrot.slane %v546_v0, %v1203_v14  ;;  %v573_v7 = vrot.slane %v546_v0, %v1206_v15  ;;  %v581_v8 = vrot.slane %v546_v0, %v1213_v18  ;;  %v589_v61 = vrot.slane %v546_v0, %v1217_v20 }
 0x114   :  { %v597_v43 = vrot.slane %v546_v0, %v1228_v27  ;;  %v605_v19 = vrot.slane %v546_v0, %v1234_v32  ;;  %v613_v30 = vrot.slane %v546_v0, %v1242_v39  ;;  %v621_v36 = vrot.slane %v546_v0, %v1253_v50 }
 0x115   :  { %v569_v9 = vadd.f32 %v568_v6, %v1225_v26  ;;  %v574_v10 = vadd.f32 %v573_v7, %v1210_v17  ;;  %v582_v5 = vadd.f32 %v581_v8, %v1208_v16  ;;  %v590_v22 = vadd.f32 %v589_v61, %v1222_v24 }
 0x116   :  { %v598_v29 = vadd.f32 %v597_v43, %v1239_v38  ;;  %v606_v35 = vadd.f32 %v605_v19, %v1245_v42  ;;  %v614_v44 = vadd.f32 %v613_v30, %v1250_v49  ;;  %v622_v52 = vadd.f32 %v621_v36, %v1259_v59 }
 0x117   :  { %vm575_vm8 = vcmp.gt.f32.partialorder %v574_v10, %v569_v9  ;;  %v577_v11 = vmax.f32 %v569_v9, %v574_v10 }
 0x118   :  { %v576_v13 = vsel %vm575_vm8, 1, %v1120_v4 }
 0x119   :  { %vm583_vm9 = vcmp.gt.f32.partialorder %v582_v5, %v577_v11  ;;  %v585_v21 = vmax.f32 %v577_v11, %v582_v5  ;;  %v643_v5 = vld [vmem:[#allocation4 + $0x6] sm:$0x1] }
 0x11a   :  { %v584_v25 = vsel %vm583_vm9, 2, %v576_v13  ;;  %vm644_vm2 = vcmp.ne.s32.totalorder %v643_v5, 0 }
 0x11b   :  { %vm591_vm11 = vcmp.gt.f32.partialorder %v590_v22, %v585_v21  ;;  %v593_v28 = vmax.f32 %v585_v21, %v590_v22 }
 0x11c   :  { %v592_v31 = vsel %vm591_vm11, 3, %v584_v25 }
 0x11d   :  { %vm599_vm12 = vcmp.gt.f32.partialorder %v598_v29, %v593_v28  ;;  %v601_v33 = vmax.f32 %v593_v28, %v598_v29 }
 0x11e   :  { %v600_v40 = vsel %vm599_vm12, 4, %v592_v31  ;;  %v717_v31 = vsel %vm644_vm2, 1, %v1120_v4 }
 0x11f   :  { %vm607_vm13 = vcmp.gt.f32.partialorder %v606_v35, %v601_v33  ;;  %v609_v41 = vmax.f32 %v601_v33, %v606_v35 }
 0x120   :  { %v608_v45 = vsel %vm607_vm13, 5, %v600_v40 }
 0x121   :  { %vm615_vm14 = vcmp.gt.f32.partialorder %v614_v44, %v609_v41  ;;  %v617_v51 = vmax.f32 %v609_v41, %v614_v44 }
 0x122   :  { %v616_v3 = vsel %vm615_vm14, 6, %v608_v45  ;;  %v641_v45 = vld [vmem:[#allocation7 + $0x18] sm:$0xff]  }
 0x123   :  { %vm623_vm1 = vcmp.gt.f32.partialorder %v622_v52, %v617_v51  ;;  %v625_v6 = vmax.f32 %v617_v51, %v622_v52  ;;  %v721_v51 = vrot.slane %v717_v31, %v1203_v14 }
 0x124   :  { %v1399_v7 = vsel %vm623_vm1, 7, %v616_v3 }
 0x125   :  { %v632_v8 = vsel %vm1395_vm15, %v1399_v7, %v1199_v12  ;;  %v636_v9 = vadd.f32 %v625_v6, %v551_v46  ;;  %vm1426_vm12 = vcmp.eq.s32.totalorder %v721_v51, 1 }
 0x127   :  { %v637_v34 = vsel %vm1395_vm15, %v636_v9, %v546_v0  ;;  %v642_v9 = vunpack.c.l.bf16 %v641_v45 }
 0x128   :  { %v659_v10 = vrot.slane %v637_v34, %v1203_v14  ;;  %v664_v61 = vrot.slane %v637_v34, %v1206_v15  ;;  %v672_v11 = vrot.slane %v637_v34, %v1213_v18  ;;  %v680_v21 = vrot.slane %v637_v34, %v1217_v20 }
 0x129   :  { %v688_v0 = vrot.slane %v637_v34, %v1228_v27  ;;  %v696_v29 = vrot.slane %v637_v34, %v1234_v32  ;;  %v704_v36 = vrot.slane %v637_v34, %v1242_v39  ;;  %v712_v44 = vrot.slane %v637_v34, %v1253_v50 }
 0x12a   :  { %v660_v43 = vadd.f32 %v659_v10, %v1225_v26  ;;  %v665_v13 = vadd.f32 %v664_v61, %v1210_v17  ;;  %v673_v19 = vadd.f32 %v672_v11, %v1208_v16  ;;  %v681_v28 = vadd.f32 %v680_v21, %v1222_v24 }
 0x12b   :  { %v689_v35 = vadd.f32 %v688_v0, %v1239_v38  ;;  %v697_v41 = vadd.f32 %v696_v29, %v1245_v42  ;;  %v705_v3 = vadd.f32 %v704_v36, %v1250_v49  ;;  %v713_v61 = vadd.f32 %v712_v44, %v1259_v59  ;;  %v734_v36 = vld [vmem:[#allocation4 + $0x7] sm:$0x1] }
 0x12c   :  { %vm666_vm3 = vcmp.gt.f32.partialorder %v665_v13, %v660_v43  ;;  %v668_v22 = vmax.f32 %v660_v43, %v665_v13  ;;  %vm735_vm14 = vcmp.ne.s32.totalorder %v734_v36, 0 }
 0x12d   :  { %v667_v23 = vsel %vm666_vm3, 1, %v1120_v4  ;;  %v808_v44 = vsel %vm735_vm14, 1, %v1120_v4 }
 0x12e   :  { %vm674_vm5 = vcmp.gt.f32.partialorder %v673_v19, %v668_v22  ;;  %v676_v25 = vmax.f32 %v668_v22, %v673_v19  ;;  %v812_v51 = vrot.slane %v808_v44, %v1203_v14 }
 0x12f   :  { %v675_v30 = vsel %vm674_vm5, 2, %v667_v23 }
 0x130   :  { %vm682_vm6 = vcmp.gt.f32.partialorder %v681_v28, %v676_v25  ;;  %v684_v33 = vmax.f32 %v676_v25, %v681_v28  ;;  %vm1456_vm1 = vcmp.eq.s32.totalorder %v812_v51, 1 }
 0x131   :  { %v683_v37 = vsel %vm682_vm6, 3, %v675_v30 }
 0x132   :  { %vm690_vm8 = vcmp.gt.f32.partialorder %v689_v35, %v684_v33  ;;  %v692_v40 = vmax.f32 %v684_v33, %v689_v35 }
 0x133   :  { %v691_v46 = vsel %vm690_vm8, 4, %v683_v37 }
 0x134   :  { %vm698_vm9 = vcmp.gt.f32.partialorder %v697_v41, %v692_v40  ;;  %v700_v52 = vmax.f32 %v692_v40, %v697_v41 }
 0x135   :  { %v699_v6 = vsel %vm698_vm9, 5, %v691_v46  ;;  %v733_v46 = vunpack.c.h.bf16 %v641_v45 }
 0x136   :  { %vm706_vm11 = vcmp.gt.f32.partialorder %v705_v3, %v700_v52  ;;  %v708_v10 = vmax.f32 %v700_v52, %v705_v3 }
 0x137   :  { %v707_v11 = vsel %vm706_vm11, 6, %v699_v6 }
 0x138   :  { %vm714_vm13 = vcmp.gt.f32.partialorder %v713_v61, %v708_v10  ;;  %v716_v43 = vmax.f32 %v708_v10, %v713_v61 }
 0x139   :  { %v1430_v13 = vsel %vm714_vm13, 7, %v707_v11 }
 0x13a   :  { %v727_v21 = vadd.f32 %v716_v43, %v642_v9  ;;  %v723_v22 = vsel %vm1426_vm12, %v1430_v13, %v1199_v12 }
 0x13c   :  { %v728_v19 = vsel %vm1426_vm12, %v727_v21, %v637_v34 }
 0x13d   :  { %v750_v0 = vrot.slane %v728_v19, %v1203_v14  ;;  %v755_v23 = vrot.slane %v728_v19, %v1206_v15  ;;  %v763_v25 = vrot.slane %v728_v19, %v1213_v18  ;;  %v771_v30 = vrot.slane %v728_v19, %v1217_v20 }
 0x13e   :  { %v779_v35 = vrot.slane %v728_v19, %v1228_v27  ;;  %v787_v40 = vrot.slane %v728_v19, %v1234_v32  ;;  %v803_v41 = vrot.slane %v728_v19, %v1253_v50 }
 0x13f   :  { %v751_v28 = vadd.f32 %v750_v0, %v1225_v26  ;;  %v756_v29 = vadd.f32 %v755_v23, %v1210_v17  ;;  %v764_v33 = vadd.f32 %v763_v25, %v1208_v16  ;;  %v772_v34 = vadd.f32 %v771_v30, %v1222_v24 }
 0x140   :  { %v780_v18 = vadd.f32 %v779_v35, %v1239_v38  ;;  %v795_v26 = vrot.slane %v728_v19, %v1242_v39  ;;  %v788_v20 = vadd.f32 %v787_v40, %v1245_v42  ;;  %v804_v32 = vadd.f32 %v803_v41, %v1259_v59  ;;  %v830_v39 = vpop.permute.xlu0 %829 }
 0x141   :  { %v759_v31 = vmax.f32 %v751_v28, %v756_v29  ;;  %vm757_vm2 = vcmp.gt.f32.partialorder %v756_v29, %v751_v28 }
 0x142   :  { %v796_v27 = vadd.f32 %v795_v26, %v1250_v49  ;;  %v758_v9 = vsel %vm757_vm2, 1, %v1120_v4 }
 0x143   :  { %v767_v37 = vmax.f32 %v759_v31, %v764_v33  ;;  %vm765_vm3 = vcmp.gt.f32.partialorder %v764_v33, %v759_v31 }
 0x144   :  { %v766_v14 = vsel %vm765_vm3, 2, %v758_v9 }
 0x145   :  { %v775_v15 = vmax.f32 %v767_v37, %v772_v34  ;;  %vm773_vm5 = vcmp.gt.f32.partialorder %v772_v34, %v767_v37 }
 0x146   :  { %v774_v11 = vsel %vm773_vm5, 3, %v766_v14 }
 0x147   :  { %v783_v17 = vmax.f32 %v775_v15, %v780_v18  ;;  %vm781_vm6 = vcmp.gt.f32.partialorder %v780_v18, %v775_v15 }
 0x149   :  { %v791_v16 = vmax.f32 %v783_v17, %v788_v20 }
 0x14b   :  { %v799_v24 = vmax.f32 %v791_v16, %v796_v27 }
 0x14d   :  { %v807_v38 = vmax.f32 %v799_v24, %v804_v32 }
 0x14f   :  { %v818_v52 = vadd.f32 %v807_v38, %v733_v46 }
 0x151   :  { %v819_v42 = vsel %vm1456_vm1, %v818_v52, %v728_v19 }
 0x152   :  { %v832_v50 = vadd.f32 %v830_v39, %v819_v42 }
 0x154   :  { %v833_v49 = vrot.slane %v832_v50, 4 }
 0x156   :  { %v834_v6 = vmax.f32 %v832_v50, %v833_v49 }
 0x158   :  { %v835_v45 = vrot.slane %v834_v6, 2 }
 0x15a   :  { %v836_v59 = vmax.f32 %v834_v6, %v835_v45 }
 0x15c   :  { %v837_v10 = vrot.slane %v836_v59, 1 }
 0x15e   :  { %v838_v61 = vmax.f32 %v836_v59, %v837_v10 }
 0x160   :  { %vm839_vm8 = vcmp.eq.f32.partialorder %v832_v50, %v838_v61  ;;  %850 = vst [vmem:[#allocation11] sm:$0x1] %v838_v61 }
 0x161   :  { %v840_v43 = vsel %vm839_vm8, %v1199_v12, 8 }
 0x162   :  { %1071 = shalt.err (!%p1068_p0)
}
 0x163   :  { %s1072_s10 = scalar_lea.hbm %s1534_s5, 16 }
 0x164   :  { %p1073_p1 = scmp.ne.s32.totalorder %s1534_s5, %s1072_s10  ;;  %p1076_p2 = scmp.lt.u32.totalorder %s1072_s10, %s1534_s5 }
 0x166   :  { %p1078_p3 = pnand %p1076_p2, %p1073_p1 }
 0x168   :  { %1081 = shalt.err (!%p1078_p3)
}
 0x169   :  { %948 = dma.vmem_to_hbm [thread:$0]  %s946_s3, 16, %s1534_s5, [#allocation12]   ;;  %v782_v4 = vsel %vm781_vm6, 4, %v774_v11  ;;  %vm789_vm9 = vcmp.gt.f32.partialorder %v788_v20, %v783_v17  ;;  %v841_v21 = vrot.slane %v840_v43, 4  ;;  %vm797_vm13 = vcmp.gt.f32.partialorder %v796_v27, %v791_v16 }
 0x16a   :  { %v790_v19 = vsel %vm789_vm9, 5, %v782_v4  ;;  %vm805_vm14 = vcmp.gt.f32.partialorder %v804_v32, %v799_v24  ;;  %s1126_s5 = smov [#allocation10]  }
 0x16b   :  { %vm842_vm11 = vcmp.lt.s32.totalorder %v840_v43, %v841_v21  ;;  %v798_v25 = vsel %vm797_vm13, 6, %v790_v19  ;;  %s935_s17 = sshll.u32 %s1126_s5, 4  ;;  %s936_s17 = int_to_ptr.vmem [resolvable:$true] %s935_s17 }
 0x16c   :  { %v843_v0 = vsel %vm842_vm11, %v840_v43, %v841_v21  ;;  %v806_v30 = vsel %vm805_vm14, 7, %v798_v25  ;;  %s1082_s1 = scalar_lea.vmem %s936_s17, 128  ;;  %p1087_p5 = scmp.lt.s32.totalorder %s936_s17, %s936_s17 }
 0x16d   :  { %v844_v23 = vrot.slane %v843_v0, 2  ;;  %v814_v33 = vsel %vm1456_vm1, %v806_v30, %v1199_v12  ;;  %p1083_p4 = scmp.ne.s32.totalorder %s936_s17, %s1082_s1  ;;  %p1088_p6 = scmp.lt.s32.totalorder %s1082_s1, %s1082_s1 }
 0x16f   :  { %vm845_vm2 = vcmp.lt.s32.totalorder %v843_v0, %v844_v23  ;;  %p1089_p7 = por %p1088_p6, %p1087_p5 }
 0x170   :  { %v846_v28 = vsel %vm845_vm2, %v843_v0, %v844_v23 }
 0x171   :  { %v847_v29 = vrot.slane %v846_v28, 1  ;;  %p1090_p8 = pnand %p1089_p7, %p1083_p4 }
 0x173   :  { %vm848_vm3 = vcmp.lt.s32.totalorder %v846_v28, %v847_v29 }
 0x174   :  { %v849_v31 = vsel %vm848_vm3, %v846_v28, %v847_v29 }
 0x175   :  { %851 = vst [vmem:[#allocation10 + $0x7] sm:$0x1] %v849_v31  ;;  %vm854_vm5 = vcmp.eq.s32.totalorder %v1199_v12, %v849_v31 }
 0x176   :  { %v855_v35 = vsel %vm854_vm5, %v814_v33, 0 }
 0x177   :  { %v856_v36 = vrot.slane %v855_v35, 4 }
 0x179   :  { %v857_v37 = vadd.s32 %v856_v36, %v855_v35 }
 0x17b   :  { %v858_v34 = vrot.slane %v857_v37, 2 }
 0x17d   :  { %v859_v40 = vadd.s32 %v858_v34, %v857_v37 }
 0x17f   :  { %v860_v15 = vrot.slane %v859_v40, 1 }
 0x181   :  { %v861_v18 = vadd.s32 %v860_v15, %v859_v40 }
 0x183   :  { %862 = vst [vmem:[#allocation10 + $0x6] sm:$0x1] %v861_v18  ;;  %vm865_vm6 = vcmp.eq.s32.totalorder %v1199_v12, %v861_v18 }
 0x184   :  { %v866_v26 = vsel %vm865_vm6, %v723_v22, 0 }
 0x185   :  { %v867_v17 = vrot.slane %v866_v26, 4 }
 0x187   :  { %v868_v20 = vadd.s32 %v867_v17, %v866_v26 }
 0x189   :  { %v869_v41 = vrot.slane %v868_v20, 2 }
 0x18b   :  { %v870_v16 = vadd.s32 %v869_v41, %v868_v20 }
 0x18d   :  { %v871_v27 = vrot.slane %v870_v16, 1 }
 0x18f   :  { %v872_v44 = vadd.s32 %v871_v27, %v870_v16 }
 0x191   :  { %873 = vst [vmem:[#allocation10 + $0x5] sm:$0x1] %v872_v44  ;;  %vm876_vm1 = vcmp.eq.s32.totalorder %v1199_v12, %v872_v44 }
 0x192   :  { %v877_v46 = vsel %vm876_vm1, %v632_v8, 0 }
 0x193   :  { %v878_v5 = vrot.slane %v877_v46, 4 }
 0x195   :  { %v879_v24 = vadd.s32 %v878_v5, %v877_v46 }
 0x197   :  { %v880_v32 = vrot.slane %v879_v24, 2 }
 0x199   :  { %v881_v13 = vadd.s32 %v880_v32, %v879_v24 }
 0x19b   :  { %v882_v22 = vrot.slane %v881_v13, 1 }
 0x19d   :  { %v883_v51 = vadd.s32 %v882_v22, %v881_v13 }
 0x19f   :  { %884 = vst [vmem:[#allocation10 + $0x4] sm:$0x1] %v883_v51  ;;  %vm887_vm12 = vcmp.eq.s32.totalorder %v1199_v12, %v883_v51 }
 0x1a0   :  { %v888_v38 = vsel %vm887_vm12, %v541_v60, 0 }
 0x1a1   :  { %v889_v62 = vrot.slane %v888_v38, 4 }
 0x1a3   :  { %v890_v52 = vadd.s32 %v889_v62, %v888_v38 }
 0x1a5   :  { %v891_v39 = vrot.slane %v890_v52, 2 }
 0x1a7   :  { %v892_v7 = vadd.s32 %v891_v39, %v890_v52 }
 0x1a9   :  { %v893_v8 = vrot.slane %v892_v7, 1 }
 0x1ab   :  { %v894_v3 = vadd.s32 %v893_v8, %v892_v7 }
 0x1ad   :  { %895 = vst [vmem:[#allocation10 + $0x3] sm:$0x1] %v894_v3  ;;  %vm898_vm15 = vcmp.eq.s32.totalorder %v1199_v12, %v894_v3 }
 0x1ae   :  { %v899_v42 = vsel %vm898_vm15, %v450_v55, 0 }
 0x1af   :  { %v900_v47 = vrot.slane %v899_v42, 4 }
 0x1b1   :  { %v901_v50 = vadd.s32 %v900_v47, %v899_v42 }
 0x1b3   :  { %v902_v49 = vrot.slane %v901_v50, 2 }
 0x1b5   :  { %v903_v56 = vadd.s32 %v902_v49, %v901_v50 }
 0x1b7   :  { %v904_v60 = vrot.slane %v903_v56, 1 }
 0x1b9   :  { %v905_v6 = vadd.s32 %v904_v60, %v903_v56 }
 0x1bb   :  { %906 = vst [vmem:[#allocation10 + $0x2] sm:$0x1] %v905_v6  ;;  %vm909_vm4 = vcmp.eq.s32.totalorder %v1199_v12, %v905_v6 }
 0x1bc   :  { %v910_v45 = vsel %vm909_vm4, %v359_v58, 0 }
 0x1bd   :  { %v911_v48 = vrot.slane %v910_v45, 4 }
 0x1bf   :  { %v912_v9 = vadd.s32 %v911_v48, %v910_v45 }
 0x1c1   :  { %v913_v59 = vrot.slane %v912_v9, 2 }
 0x1c3   :  { %v914_v53 = vadd.s32 %v913_v59, %v912_v9 }
 0x1c5   :  { %v915_v55 = vrot.slane %v914_v53, 1 }
 0x1c7   :  { %v916_v14 = vadd.s32 %v915_v55, %v914_v53 }
 0x1c9   :  { %917 = vst [vmem:[#allocation10 + $0x1] sm:$0x1] %v916_v14  ;;  %vm920_vm10 = vcmp.eq.s32.totalorder %v1199_v12, %v916_v14 }
 0x1ca   :  { %v921_v10 = vsel %vm920_vm10, %v268_v2, 0 }
 0x1cb   :  { %v922_v54 = vrot.slane %v921_v10, 4 }
 0x1cd   :  { %v923_v61 = vadd.s32 %v922_v54, %v921_v10 }
 0x1cf   :  { %v924_v11 = vrot.slane %v923_v61, 2 }
 0x1d1   :  { %v925_v57 = vadd.s32 %v924_v11, %v923_v61 }
 0x1d3   :  { %v926_v58 = vrot.slane %v925_v57, 1 }
 0x1d5   :  { %v927_v43 = vadd.s32 %v926_v58, %v925_v57 }
 0x1d7   :  { %928 = vst [vmem:[#allocation10] sm:$0x1] %v927_v43 }
 0x1d8   :  { %1093 = shalt.err (!%p1090_p8)
}
 0x1d9   :  { %s1094_s20 = scalar_lea.hbm %s1533_s4, 128 }
 0x1da   :  { %p1095_p9 = scmp.ne.s32.totalorder %s1533_s4, %s1094_s20  ;;  %p1098_p10 = scmp.lt.u32.totalorder %s1094_s20, %s1533_s4 }
 0x1dc   :  { %p1100_p11 = pnand %p1098_p10, %p1095_p9 }
 0x1de   :  { %1103 = shalt.err (!%p1100_p11)
}
 0x1df   :  { %938 = dma.vmem_to_hbm [thread:$0]  %s936_s17, 128, %s1533_s4, [#allocation6]  }
 0x1e0   :  { %1108 = dma.done.wait [#allocation6], 128  }
 0x1e1   :  { %1109 = vsyncadd [#allocation6], 4294967168 }
 0x1e2   :  { %1110 = dma.done.wait [#allocation12], 16  }
 0x1e3   :  { %1111 = vsyncadd [#allocation12], 4294967280 }
 0x1e4   :  { %955 = vsyncpa [#allocation5], 1 }
 0x1e5   :  { %956 = vsyncpa [#allocation8], 1 }
 0x1e6   :  { %957 = vsyncpa [#allocation6], 1 }
 0x1e7   :  { %958 = vsyncpa [#allocation12], 1 }

</bundles_post_ra>
